<compile_context>
chip_gen: v5e
topology: v5e:2x2
jax: 0.10.0
libtpu: 0.0.40
codegen_flags: <defaults>
</compile_context>

<pallas_src>
import functools
import math

import jax
import jax.numpy as jnp
import numpy as np
from jax.experimental import pallas as pl
from jax.experimental.pallas import tpu as pltpu  # noqa: F401  (kept for completeness)

LN_EPS = 1e-6          # norm_layer = partial(nn.LayerNorm, eps=1e-06)
INV_SQRT2 = 1.0 / math.sqrt(2.0)


# ----------------------------- shared math helpers ----------------------------- #

def _layernorm(x, w, b):
    mu = jnp.mean(x, axis=-1, keepdims=True)
    var = jnp.mean((x - mu) ** 2, axis=-1, keepdims=True)
    return (x - mu) * jax.lax.rsqrt(var + LN_EPS) * w + b


def _gelu(x):  # exact (erf) GELU, like torch.nn.GELU()
    return 0.5 * x * (1.0 + jax.lax.erf(x * INV_SQRT2))


def _mxu(a, w_bf16):
    # MXU matmul: activation cast to bf16 in-kernel, weight already bf16, f32 accumulation.
    return jnp.dot(a.astype(jnp.bfloat16), w_bf16, preferred_element_type=jnp.float32)


# ------------------------------- fused Pallas kernel --------------------------- #

def fused_kernel(patches_ref, pw_ref, posb_ref, prefix_ref,
                 vecs_ref, fc1b_ref, wmat_ref, fc2w_ref, normwb_ref,
                 o_ref, *, num_heads, batch, n_prefix):
    BP, _K = patches_ref.shape                  # (B*P, K)
    D = pw_ref.shape[1]
    depth = wmat_ref.shape[0]
    hidden = fc1b_ref.shape[2]
    H = num_heads
    hd = D // H
    B = batch
    P = BP // B
    N = n_prefix + P

    # Patch embedding (Conv2d k=s=patch == matmul), bias + patch pos pre-folded into posb.
    emb = _mxu(patches_ref[...], pw_ref[...]) + posb_ref[...]          # (B*P, D) f32

    # Build the row-batched token sequence: per batch item [cls, part1..3, patches].
    prefix = prefix_ref[...]                                            # (n_prefix, D)
    parts = []
    for b in range(B):                                                  # B is tiny & static
        parts.append(prefix)
        parts.append(emb[b * P:(b + 1) * P])
    seq = jnp.concatenate(parts, axis=0)                                # (B*N, D)

    for d in range(depth):                       # static loop, depth is tiny
        vec = vecs_ref[d]                        # (6, D) f32: ln1_w ln1_b proj_b ln2_w ln2_b fc2_b
        ln1_w, ln1_b, proj_b = vec[0:1], vec[1:2], vec[2:3]
        ln2_w, ln2_b, fc2_b = vec[3:4], vec[4:5], vec[5:6]
        wm = wmat_ref[d]                         # (D, 3D+D+hidden) bf16 = [qkv_w | proj_w | fc1_w]
        qkv_w = wm[:, 0:3 * D]                   # Q columns pre-scaled by hd**-0.5 host-side
        proj_w = wm[:, 3 * D:4 * D]
        fc1_w = wm[:, 4 * D:4 * D + hidden]
        fc1_b = fc1b_ref[d]                      # (1, hidden) f32
        fc2_w = fc2w_ref[d]                      # (hidden, D) bf16

        # ---- Attention branch (spec: Attention.forward; qkv_bias=False, drops=0) ----
        h = _layernorm(seq, ln1_w, ln1_b)
        qkv = _mxu(h, qkv_w)                     # (B*N, 3D) f32, one fused QKV matmul

        def split_heads(col0):
            # (B*N, D) head columns -> (H*B, N, hd); batched index z = h*B + b.
            # Reshapes only split leading / second-minor dims at 8-row boundaries (no-ops).
            return jnp.stack(
                [qkv[:, col0 + hh * hd: col0 + (hh + 1) * hd] for hh in range(H)],
                axis=0).reshape(H * B, N, hd)

        q = split_heads(0).astype(jnp.bfloat16)
        k = split_heads(D).astype(jnp.bfloat16)
        v = split_heads(2 * D).astype(jnp.bfloat16)

        s = jnp.einsum('znd,zmd->znm', q, k,
                       preferred_element_type=jnp.float32)              # (H*B, N, N) f32
        s = s - jnp.max(s, axis=-1, keepdims=True)
        p = jnp.exp(s)
        p = p * pl.reciprocal(jnp.sum(p, axis=-1, keepdims=True), approx=True)
        av = jnp.einsum('znm,zmd->znd', p.astype(jnp.bfloat16), v,
                        preferred_element_type=jnp.float32)              # (H*B, N, hd)
        av = av.reshape(H, B * N, hd)
        attn = jnp.concatenate([av[hh] for hh in range(H)], axis=-1)     # (B*N, D)
        seq = seq + _mxu(attn, proj_w) + proj_b  # DropPath/Dropout = identity

        # ---- MLP branch ----
        h2 = _layernorm(seq, ln2_w, ln2_b)
        a = _gelu(_mxu(h2, fc1_w) + fc1_b)
        seq = seq + _mxu(a, fc2_w) + fc2_b

    out = _layernorm(seq, normwb_ref[0:1], normwb_ref[1:2])             # (B*N, D)
    o_ref[...] = out.reshape(B, N, D)            # leading-dim split only (layout no-op)


# --------------------------------- JAX wrappers --------------------------------- #

def patchify(x_nchw, patch):
    # Non-overlapping Conv2d(kernel=stride=patch) == patch extraction + matmul.
    B, C, H, W = x_nchw.shape
    gy = (H - patch) // patch + 1
    gx = (W - patch) // patch + 1
    p = x_nchw.reshape(B, C, gy, patch, gx, patch)
    p = p.transpose(0, 2, 4, 1, 3, 5).reshape(B, gy * gx, C * patch * patch)
    return p


def transreid_forward(x, params, *, num_heads, patch):
    """Returns (global_feat, local_feat_1, local_feat_2, local_feat_3, local_feat_all)."""
    B = x.shape[0]
    patches = patchify(x, patch)                           # (B, P, K)
    P, K = patches.shape[1], patches.shape[2]
    patches_flat = patches.reshape(B * P, K)               # row-batched for one big matmul
    D = params['patch_proj_w'].shape[0]
    depth = len(params['blocks'])
    hidden = params['blocks'][0]['fc1_w'].shape[1]
    n_prefix = 4
    N = n_prefix + P
    hd = D // num_heads
    scale = float(hd) ** -0.5

    # Pre-cast weights to bf16 host-side (halves weight DMA, removes in-kernel casts).
    patch_w = params['patch_proj_w'].reshape(D, K).T.astype(jnp.bfloat16)   # (K, D)
    # Fold patch-proj bias + patch positional embedding into one f32 add tensor.
    posb = (jnp.tile(params['pos_embed'][0], (B, 1))
            + params['patch_proj_b'].reshape(1, D))                          # (B*P, D)

    # camera == view == 0  ->  pos = cat(cls_pos, part1..3_pos, pos_embed); pos_drop(p=0) = id.
    prefix_tok = jnp.concatenate([params['cls_token'], params['part_token1'],
                                  params['part_token2'], params['part_token3']], axis=1)[0]
    prefix_pos = jnp.concatenate([params['cls_pos'], params['part1_pos'],
                                  params['part2_pos'], params['part3_pos']], axis=1)[0]
    prefix = prefix_tok + prefix_pos                       # (4, D)

    # Pack per-block params into a few stacked tensors (fewer, bigger DMAs).
    blk_vecs = jnp.stack([
        jnp.concatenate([b['ln1_w'], b['ln1_b'], b['proj_b'],
                         b['ln2_w'], b['ln2_b'], b['fc2_b']], axis=0)
        for b in params['blocks']], axis=0)                # (depth, 6, D) f32
    blk_fc1b = jnp.stack([b['fc1_b'] for b in params['blocks']], axis=0)   # (depth, 1, hidden)

    def pack_w(b):
        # Fold the attention scale into the Q columns of qkv_w (free at runtime).
        qkv_w = b['qkv_w'].at[:, 0:D].multiply(scale)
        return jnp.concatenate([qkv_w, b['proj_w'], b['fc1_w']], axis=1)

    blk_wmat = jnp.stack([pack_w(b) for b in params['blocks']],
                         axis=0).astype(jnp.bfloat16)      # (depth, D, 4D + hidden) bf16
    blk_fc2w = jnp.stack([b['fc2_w'] for b in params['blocks']],
                         axis=0).astype(jnp.bfloat16)      # (depth, hidden, D) bf16
    norm_wb = jnp.concatenate([params['norm_w'], params['norm_b']], axis=0)  # (2, D)

    # Single kernel invocation, no grid: whole batch + all weights resident in VMEM.
    seq = pl.pallas_call(
        functools.partial(fused_kernel, num_heads=num_heads, batch=B, n_prefix=n_prefix),
        out_shape=jax.ShapeDtypeStruct((B, N, D), jnp.float32),
    )(patches_flat, patch_w, posb, prefix,
      blk_vecs, blk_fc1b, blk_wmat, blk_fc2w, norm_wb)

    # local_feature=False, gem_pool=False
    return seq[:, 0], seq[:, 1], seq[:, 2], seq[:, 3], seq[:, 4:]


# ------------------------------ pure-JAX reference ------------------------------ #

def _ref_block(x, blk, num_heads):
    B, N, D = x.shape
    hd = D // num_heads
    scale = hd ** -0.5
    hi = jax.lax.Precision.HIGHEST
    h = _layernorm(x, blk['ln1_w'], blk['ln1_b'])
    qkv = jnp.einsum('bnd,de->bne', h, blk['qkv_w'], precision=hi)
    qkv = qkv.reshape(B, N, 3, num_heads, hd).transpose(2, 0, 3, 1, 4)
    q, k, v = qkv[0], qkv[1], qkv[2]
    attn = jnp.einsum('bhnd,bhmd->bhnm', q, k, precision=hi) * scale
    attn = jax.nn.softmax(attn, axis=-1)
    xa = jnp.einsum('bhnm,bhmd->bhnd', attn, v, precision=hi)
    xa = xa.transpose(0, 2, 1, 3).reshape(B, N, D)
    xa = jnp.einsum('bnd,de->bne', xa, blk['proj_w'], precision=hi) + blk['proj_b']
    x = x + xa
    h2 = _layernorm(x, blk['ln2_w'], blk['ln2_b'])
    a = _gelu(jnp.einsum('bnd,de->bne', h2, blk['fc1_w'], precision=hi) + blk['fc1_b'])
    return x + jnp.einsum('bnd,de->bne', a, blk['fc2_w'], precision=hi) + blk['fc2_b']


def ref_forward(x, params, *, num_heads, patch):
    hi = jax.lax.Precision.HIGHEST
    B = x.shape[0]
    p = patchify(x, patch)
    D = params['patch_proj_w'].shape[0]
    K = p.shape[-1]
    tok = jnp.einsum('bpk,kd->bpd', p, params['patch_proj_w'].reshape(D, K).T,
                     precision=hi) + params['patch_proj_b']
    expand = lambda t: jnp.broadcast_to(t, (B, 1, D))
    seq = jnp.concatenate(
        [expand(params['cls_token']), expand(params['part_token1']),
         expand(params['part_token2']), expand(params['part_token3']), tok], axis=1)
    pos = jnp.concatenate(
        [params['cls_pos'], params['part1_pos'], params['part2_pos'],
         params['part3_pos'], params['pos_embed']], axis=1)
    seq = seq + pos
    for blk in params['blocks']:
        seq = _ref_block(seq, blk, num_heads)
    seq = _layernorm(seq, params['norm_w'], params['norm_b'])
    return seq[:, 0], seq[:, 1], seq[:, 2], seq[:, 3], seq[:, 4:]


# --------------------------------- parameter init -------------------------------- #

def init_params(key, *, in_chans, patch, embed_dim, depth, mlp_ratio, num_patches):
    hidden = int(embed_dim * mlp_ratio)
    f32 = jnp.float32

    def nrm(k, shape, std=0.02):
        return (std * jax.random.normal(k, shape)).astype(f32)

    n_keys = 11 + depth * 6
    keys = list(jax.random.split(key, n_keys))
    ki = iter(keys)

    params = dict(
        patch_proj_w=nrm(next(ki), (embed_dim, in_chans, patch, patch), 0.05),
        patch_proj_b=nrm(next(ki), (embed_dim,), 0.05),
        cls_token=nrm(next(ki), (1, 1, embed_dim)),
        part_token1=nrm(next(ki), (1, 1, embed_dim)),
        part_token2=nrm(next(ki), (1, 1, embed_dim)),
        part_token3=nrm(next(ki), (1, 1, embed_dim)),
        cls_pos=nrm(next(ki), (1, 1, embed_dim)),
        part1_pos=nrm(next(ki), (1, 1, embed_dim)),
        part2_pos=nrm(next(ki), (1, 1, embed_dim)),
        part3_pos=nrm(next(ki), (1, 1, embed_dim)),
        pos_embed=nrm(next(ki), (1, num_patches, embed_dim)),
        norm_w=jnp.ones((1, embed_dim), f32),
        norm_b=jnp.zeros((1, embed_dim), f32),
        blocks=[],
    )
    for _ in range(depth):
        blk = dict(
            ln1_w=jnp.ones((1, embed_dim), f32),
            ln1_b=jnp.zeros((1, embed_dim), f32),
            # weights stored in (Din, Dout) orientation (i.e. PyTorch W^T)
            qkv_w=nrm(next(ki), (embed_dim, 3 * embed_dim)),
            proj_w=nrm(next(ki), (embed_dim, embed_dim)),
            proj_b=nrm(next(ki), (1, embed_dim)),
            ln2_w=jnp.ones((1, embed_dim), f32),
            ln2_b=jnp.zeros((1, embed_dim), f32),
            fc1_w=nrm(next(ki), (embed_dim, hidden)),
            fc1_b=nrm(next(ki), (1, hidden)),
            fc2_w=nrm(next(ki), (hidden, embed_dim)),
            fc2_b=jnp.zeros((1, embed_dim), f32),
        )
        params['blocks'].append(blk)
    return params


# -------------------------------------- main -------------------------------------- #

if __name__ == "__main__":
    B, C, H, W = 2, 4, 16, 16
    patch = 8
    embed_dim = 32
    depth = 2
    num_heads = 4
    mlp_ratio = 4.0
    num_x = (W - patch) // patch + 1
    num_y = (H - patch) // patch + 1
    num_patches = num_x * num_y

    root = jax.random.PRNGKey(0)
    kx, kp = jax.random.split(root)
    x = jax.random.normal(kx, (B, C, H, W), dtype=jnp.float32)
    params = init_params(kp, in_chans=C, patch=patch, embed_dim=embed_dim,
                         depth=depth, mlp_ratio=mlp_ratio, num_patches=num_patches)

    fwd = jax.jit(functools.partial(transreid_forward, num_heads=num_heads, patch=patch))
    outs = jax.block_until_ready(fwd(x, params))

    # sanity check against a pure-JAX f32 reference of the same forward pass
    # (loose tolerance accommodates bf16 MXU operands with f32 accumulation and the
    #  approximate EUP reciprocal in the softmax denominator — intentional tradeoffs)
    refs = ref_forward(x, params, num_heads=num_heads, patch=patch)
    for o, r in zip(outs, refs):
        np.testing.assert_allclose(np.asarray(o), np.asarray(r), rtol=5e-2, atol=5e-2)

    assert outs[0].shape == (B, embed_dim)
    assert outs[4].shape == (B, num_patches, embed_dim)
    print("KERNEL_OK")
</pallas_src>

<mosaic_0001>
module attributes {stable_mosaic.version = 11 : i64} {
  func.func @fused_kernel(%arg0: memref<8x256xf32, #tpu.memory_space<vmem>>, %arg1: memref<256x32xbf16, #tpu.memory_space<vmem>>, %arg2: memref<8x32xf32, #tpu.memory_space<vmem>>, %arg3: memref<4x32xf32, #tpu.memory_space<vmem>>, %arg4: memref<2x6x32xf32, #tpu.memory_space<vmem>>, %arg5: memref<2x1x128xf32, #tpu.memory_space<vmem>>, %arg6: memref<2x32x256xbf16, #tpu.memory_space<vmem>>, %arg7: memref<2x128x32xbf16, #tpu.memory_space<vmem>>, %arg8: memref<2x32xf32, #tpu.memory_space<vmem>>, %arg9: memref<2x8x32xf32, #tpu.memory_space<vmem>>) attributes {dimension_semantics = [], scalar_prefetch = 0 : i64, scratch_operands = 0 : i64, tpu.core_type = #tpu.core_type<tc>} {
    %c0 = arith.constant 0 : index
    %c0_0 = arith.constant 0 : index
    %0 = vector.load %arg0[%c0, %c0_0] : memref<8x256xf32, #tpu.memory_space<vmem>>, vector<8x256xf32>
    %c0_1 = arith.constant 0 : index
    %c0_2 = arith.constant 0 : index
    %1 = vector.load %arg1[%c0_1, %c0_2] : memref<256x32xbf16, #tpu.memory_space<vmem>>, vector<256x32xbf16>
    %2 = arith.truncf %0 : vector<8x256xf32> to vector<8x256xbf16>
    %cst = arith.constant dense<0.000000e+00> : vector<8x32xf32>
    %3 = tpu.matmul %2, %1, %cst {dimension_numbers = #tpu.dot_dimension_numbers<[1], [0], [0], [1], [0, 0, 1, 1], [], []>} : vector<8x256xbf16>, vector<256x32xbf16>, vector<8x32xf32> -> vector<8x32xf32>
    %c0_3 = arith.constant 0 : index
    %c0_4 = arith.constant 0 : index
    %4 = vector.load %arg2[%c0_3, %c0_4] : memref<8x32xf32, #tpu.memory_space<vmem>>, vector<8x32xf32>
    %5 = arith.addf %3, %4 : vector<8x32xf32>
    %c0_5 = arith.constant 0 : index
    %c0_6 = arith.constant 0 : index
    %6 = vector.load %arg3[%c0_5, %c0_6] : memref<4x32xf32, #tpu.memory_space<vmem>>, vector<4x32xf32>
    %7 = vector.extract_strided_slice %5 {offsets = [0, 0], sizes = [4, 32], strides = [1, 1]} : vector<8x32xf32> to vector<4x32xf32>
    %8 = vector.extract_strided_slice %5 {offsets = [4, 0], sizes = [4, 32], strides = [1, 1]} : vector<8x32xf32> to vector<4x32xf32>
    %9 = tpu.concatenate %6, %7, %6, %8 in 0 : vector<4x32xf32>, vector<4x32xf32>, vector<4x32xf32>, vector<4x32xf32> -> vector<16x32xf32>
    %c0_7 = arith.constant 0 : index
    %c0_8 = arith.constant 0 : index
    %c0_9 = arith.constant 0 : index
    %10 = vector.load %arg4[%c0_7, %c0_8, %c0_9] : memref<2x6x32xf32, #tpu.memory_space<vmem>>, vector<1x6x32xf32>
    %11 = vector.shape_cast %10 : vector<1x6x32xf32> to vector<6x32xf32>
    %12 = vector.extract_strided_slice %11 {offsets = [0, 0], sizes = [1, 32], strides = [1, 1]} : vector<6x32xf32> to vector<1x32xf32>
    %13 = vector.extract_strided_slice %11 {offsets = [1, 0], sizes = [1, 32], strides = [1, 1]} : vector<6x32xf32> to vector<1x32xf32>
    %14 = vector.extract_strided_slice %11 {offsets = [2, 0], sizes = [1, 32], strides = [1, 1]} : vector<6x32xf32> to vector<1x32xf32>
    %15 = vector.extract_strided_slice %11 {offsets = [3, 0], sizes = [1, 32], strides = [1, 1]} : vector<6x32xf32> to vector<1x32xf32>
    %16 = vector.extract_strided_slice %11 {offsets = [4, 0], sizes = [1, 32], strides = [1, 1]} : vector<6x32xf32> to vector<1x32xf32>
    %17 = vector.extract_strided_slice %11 {offsets = [5, 0], sizes = [1, 32], strides = [1, 1]} : vector<6x32xf32> to vector<1x32xf32>
    %c0_10 = arith.constant 0 : index
    %c0_11 = arith.constant 0 : index
    %c0_12 = arith.constant 0 : index
    %18 = vector.load %arg6[%c0_10, %c0_11, %c0_12] : memref<2x32x256xbf16, #tpu.memory_space<vmem>>, vector<1x32x256xbf16>
    %19 = vector.shape_cast %18 : vector<1x32x256xbf16> to vector<32x256xbf16>
    %20 = vector.extract_strided_slice %19 {offsets = [0, 0], sizes = [32, 96], strides = [1, 1]} : vector<32x256xbf16> to vector<32x96xbf16>
    %21 = vector.extract_strided_slice %19 {offsets = [0, 96], sizes = [32, 32], strides = [1, 1]} : vector<32x256xbf16> to vector<32x32xbf16>
    %22 = vector.extract_strided_slice %19 {offsets = [0, 128], sizes = [32, 128], strides = [1, 1]} : vector<32x256xbf16> to vector<32x128xbf16>
    %c0_13 = arith.constant 0 : index
    %c0_14 = arith.constant 0 : index
    %c0_15 = arith.constant 0 : index
    %23 = vector.load %arg5[%c0_13, %c0_14, %c0_15] : memref<2x1x128xf32, #tpu.memory_space<vmem>>, vector<1x1x128xf32>
    %24 = vector.shape_cast %23 : vector<1x1x128xf32> to vector<1x128xf32>
    %c0_16 = arith.constant 0 : index
    %c0_17 = arith.constant 0 : index
    %c0_18 = arith.constant 0 : index
    %25 = vector.load %arg7[%c0_16, %c0_17, %c0_18] : memref<2x128x32xbf16, #tpu.memory_space<vmem>>, vector<1x128x32xbf16>
    %26 = vector.shape_cast %25 : vector<1x128x32xbf16> to vector<128x32xbf16>
    %cst_19 = arith.constant dense<0.000000e+00> : vector<16xf32>
    %27 = vector.multi_reduction <add>, %9, %cst_19 [1] : vector<16x32xf32> to vector<16xf32>
    %28 = vector.shape_cast %27 : vector<16xf32> to vector<16x1xf32>
    %cst_20 = arith.constant 3.200000e+01 : f32
    %29 = vector.broadcast %cst_20 : f32 to vector<16x1xf32>
    %30 = arith.divf %28, %29 : vector<16x1xf32>
    %31 = vector.broadcast %30 : vector<16x1xf32> to vector<16x32xf32>
    %32 = arith.subf %9, %31 : vector<16x32xf32>
    %33 = arith.mulf %32, %32 : vector<16x32xf32>
    %cst_21 = arith.constant dense<0.000000e+00> : vector<16xf32>
    %34 = vector.multi_reduction <add>, %33, %cst_21 [1] : vector<16x32xf32> to vector<16xf32>
    %35 = vector.shape_cast %34 : vector<16xf32> to vector<16x1xf32>
    %cst_22 = arith.constant 3.200000e+01 : f32
    %36 = vector.broadcast %cst_22 : f32 to vector<16x1xf32>
    %37 = arith.divf %35, %36 : vector<16x1xf32>
    %38 = vector.broadcast %30 : vector<16x1xf32> to vector<16x32xf32>
    %39 = arith.subf %9, %38 : vector<16x32xf32>
    %cst_23 = arith.constant 9.99999997E-7 : f32
    %40 = vector.broadcast %cst_23 : f32 to vector<16x1xf32>
    %41 = arith.addf %37, %40 : vector<16x1xf32>
    %42 = math.rsqrt %41 : vector<16x1xf32>
    %43 = vector.broadcast %42 : vector<16x1xf32> to vector<16x32xf32>
    %44 = arith.mulf %39, %43 : vector<16x32xf32>
    %45 = vector.broadcast %12 : vector<1x32xf32> to vector<16x32xf32>
    %46 = arith.mulf %44, %45 : vector<16x32xf32>
    %47 = vector.broadcast %13 : vector<1x32xf32> to vector<16x32xf32>
    %48 = arith.addf %46, %47 : vector<16x32xf32>
    %49 = arith.truncf %48 : vector<16x32xf32> to vector<16x32xbf16>
    %cst_24 = arith.constant dense<0.000000e+00> : vector<16x96xf32>
    %50 = tpu.matmul %49, %20, %cst_24 {dimension_numbers = #tpu.dot_dimension_numbers<[1], [0], [0], [1], [0, 0, 1, 1], [], []>} : vector<16x32xbf16>, vector<32x96xbf16>, vector<16x96xf32> -> vector<16x96xf32>
    %51 = vector.extract_strided_slice %50 {offsets = [0, 0], sizes = [16, 8], strides = [1, 1]} : vector<16x96xf32> to vector<16x8xf32>
    %52 = vector.extract_strided_slice %50 {offsets = [0, 8], sizes = [16, 8], strides = [1, 1]} : vector<16x96xf32> to vector<16x8xf32>
    %53 = vector.extract_strided_slice %50 {offsets = [0, 16], sizes = [16, 8], strides = [1, 1]} : vector<16x96xf32> to vector<16x8xf32>
    %54 = vector.extract_strided_slice %50 {offsets = [0, 24], sizes = [16, 8], strides = [1, 1]} : vector<16x96xf32> to vector<16x8xf32>
    %55 = vector.shape_cast %51 : vector<16x8xf32> to vector<1x16x8xf32>
    %56 = vector.shape_cast %52 : vector<16x8xf32> to vector<1x16x8xf32>
    %57 = vector.shape_cast %53 : vector<16x8xf32> to vector<1x16x8xf32>
    %58 = vector.shape_cast %54 : vector<16x8xf32> to vector<1x16x8xf32>
    %59 = tpu.concatenate %55, %56, %57, %58 in 0 : vector<1x16x8xf32>, vector<1x16x8xf32>, vector<1x16x8xf32>, vector<1x16x8xf32> -> vector<4x16x8xf32>
    %60 = vector.shape_cast %59 : vector<4x16x8xf32> to vector<8x8x8xf32>
    %61 = arith.truncf %60 : vector<8x8x8xf32> to vector<8x8x8xbf16>
    %62 = vector.extract_strided_slice %50 {offsets = [0, 32], sizes = [16, 8], strides = [1, 1]} : vector<16x96xf32> to vector<16x8xf32>
    %63 = vector.extract_strided_slice %50 {offsets = [0, 40], sizes = [16, 8], strides = [1, 1]} : vector<16x96xf32> to vector<16x8xf32>
    %64 = vector.extract_strided_slice %50 {offsets = [0, 48], sizes = [16, 8], strides = [1, 1]} : vector<16x96xf32> to vector<16x8xf32>
    %65 = vector.extract_strided_slice %50 {offsets = [0, 56], sizes = [16, 8], strides = [1, 1]} : vector<16x96xf32> to vector<16x8xf32>
    %66 = vector.shape_cast %62 : vector<16x8xf32> to vector<1x16x8xf32>
    %67 = vector.shape_cast %63 : vector<16x8xf32> to vector<1x16x8xf32>
    %68 = vector.shape_cast %64 : vector<16x8xf32> to vector<1x16x8xf32>
    %69 = vector.shape_cast %65 : vector<16x8xf32> to vector<1x16x8xf32>
    %70 = tpu.concatenate %66, %67, %68, %69 in 0 : vector<1x16x8xf32>, vector<1x16x8xf32>, vector<1x16x8xf32>, vector<1x16x8xf32> -> vector<4x16x8xf32>
    %71 = vector.shape_cast %70 : vector<4x16x8xf32> to vector<8x8x8xf32>
    %72 = arith.truncf %71 : vector<8x8x8xf32> to vector<8x8x8xbf16>
    %73 = vector.extract_strided_slice %50 {offsets = [0, 64], sizes = [16, 8], strides = [1, 1]} : vector<16x96xf32> to vector<16x8xf32>
    %74 = vector.extract_strided_slice %50 {offsets = [0, 72], sizes = [16, 8], strides = [1, 1]} : vector<16x96xf32> to vector<16x8xf32>
    %75 = vector.extract_strided_slice %50 {offsets = [0, 80], sizes = [16, 8], strides = [1, 1]} : vector<16x96xf32> to vector<16x8xf32>
    %76 = vector.extract_strided_slice %50 {offsets = [0, 88], sizes = [16, 8], strides = [1, 1]} : vector<16x96xf32> to vector<16x8xf32>
    %77 = vector.shape_cast %73 : vector<16x8xf32> to vector<1x16x8xf32>
    %78 = vector.shape_cast %74 : vector<16x8xf32> to vector<1x16x8xf32>
    %79 = vector.shape_cast %75 : vector<16x8xf32> to vector<1x16x8xf32>
    %80 = vector.shape_cast %76 : vector<16x8xf32> to vector<1x16x8xf32>
    %81 = tpu.concatenate %77, %78, %79, %80 in 0 : vector<1x16x8xf32>, vector<1x16x8xf32>, vector<1x16x8xf32>, vector<1x16x8xf32> -> vector<4x16x8xf32>
    %82 = vector.shape_cast %81 : vector<4x16x8xf32> to vector<8x8x8xf32>
    %83 = arith.truncf %82 : vector<8x8x8xf32> to vector<8x8x8xbf16>
    "tpu.trace_start"() <{level = 10 : i32, message = "znd,zmd->znm"}> : () -> ()
    %cst_25 = arith.constant dense<0.000000e+00> : vector<8x8x8xf32>
    %84 = tpu.matmul %61, %72, %cst_25 {dimension_numbers = #tpu.dot_dimension_numbers<[2], [2], [1], [1], [0, 0, 0, 1, 1, 1], [0], [0]>} : vector<8x8x8xbf16>, vector<8x8x8xbf16>, vector<8x8x8xf32> -> vector<8x8x8xf32>
    "tpu.trace_stop"() : () -> ()
    %cst_26 = arith.constant dense<0xFF800000> : vector<8x8xf32>
    %85 = vector.multi_reduction <maximumf>, %84, %cst_26 [2] : vector<8x8x8xf32> to vector<8x8xf32>
    %86 = vector.shape_cast %85 : vector<8x8xf32> to vector<8x8x1xf32>
    %87 = vector.broadcast %86 : vector<8x8x1xf32> to vector<8x8x8xf32>
    %88 = arith.subf %84, %87 : vector<8x8x8xf32>
    %89 = math.exp %88 : vector<8x8x8xf32>
    %cst_27 = arith.constant dense<0.000000e+00> : vector<8x8xf32>
    %90 = vector.multi_reduction <add>, %89, %cst_27 [2] : vector<8x8x8xf32> to vector<8x8xf32>
    %91 = vector.shape_cast %90 : vector<8x8xf32> to vector<8x8x1xf32>
    %92 = tpu.reciprocal %91 {approx = true} : vector<8x8x1xf32> -> vector<8x8x1xf32>
    %93 = vector.broadcast %92 : vector<8x8x1xf32> to vector<8x8x8xf32>
    %94 = arith.mulf %89, %93 : vector<8x8x8xf32>
    %95 = arith.truncf %94 : vector<8x8x8xf32> to vector<8x8x8xbf16>
    "tpu.trace_start"() <{level = 10 : i32, message = "znm,zmd->znd"}> : () -> ()
    %cst_28 = arith.constant dense<0.000000e+00> : vector<8x8x8xf32>
    %96 = tpu.matmul %95, %83, %cst_28 {dimension_numbers = #tpu.dot_dimension_numbers<[2], [1], [1], [2], [0, 0, 0, 1, 1, 2], [0], [0]>} : vector<8x8x8xbf16>, vector<8x8x8xbf16>, vector<8x8x8xf32> -> vector<8x8x8xf32>
    "tpu.trace_stop"() : () -> ()
    %97 = vector.shape_cast %96 : vector<8x8x8xf32> to vector<4x16x8xf32>
    %98 = vector.extract_strided_slice %97 {offsets = [0, 0, 0], sizes = [1, 16, 8], strides = [1, 1, 1]} : vector<4x16x8xf32> to vector<1x16x8xf32>
    %99 = vector.shape_cast %98 : vector<1x16x8xf32> to vector<16x8xf32>
    %100 = vector.extract_strided_slice %97 {offsets = [1, 0, 0], sizes = [1, 16, 8], strides = [1, 1, 1]} : vector<4x16x8xf32> to vector<1x16x8xf32>
    %101 = vector.shape_cast %100 : vector<1x16x8xf32> to vector<16x8xf32>
    %102 = vector.extract_strided_slice %97 {offsets = [2, 0, 0], sizes = [1, 16, 8], strides = [1, 1, 1]} : vector<4x16x8xf32> to vector<1x16x8xf32>
    %103 = vector.shape_cast %102 : vector<1x16x8xf32> to vector<16x8xf32>
    %104 = vector.extract_strided_slice %97 {offsets = [3, 0, 0], sizes = [1, 16, 8], strides = [1, 1, 1]} : vector<4x16x8xf32> to vector<1x16x8xf32>
    %105 = vector.shape_cast %104 : vector<1x16x8xf32> to vector<16x8xf32>
    %106 = tpu.concatenate %99, %101, %103, %105 in 1 : vector<16x8xf32>, vector<16x8xf32>, vector<16x8xf32>, vector<16x8xf32> -> vector<16x32xf32>
    %107 = arith.truncf %106 : vector<16x32xf32> to vector<16x32xbf16>
    %cst_29 = arith.constant dense<0.000000e+00> : vector<16x32xf32>
    %108 = tpu.matmul %107, %21, %cst_29 {dimension_numbers = #tpu.dot_dimension_numbers<[1], [0], [0], [1], [0, 0, 1, 1], [], []>} : vector<16x32xbf16>, vector<32x32xbf16>, vector<16x32xf32> -> vector<16x32xf32>
    %109 = arith.addf %9, %108 : vector<16x32xf32>
    %110 = vector.broadcast %14 : vector<1x32xf32> to vector<16x32xf32>
    %111 = arith.addf %109, %110 : vector<16x32xf32>
    %cst_30 = arith.constant dense<0.000000e+00> : vector<16xf32>
    %112 = vector.multi_reduction <add>, %111, %cst_30 [1] : vector<16x32xf32> to vector<16xf32>
    %113 = vector.shape_cast %112 : vector<16xf32> to vector<16x1xf32>
    %cst_31 = arith.constant 3.200000e+01 : f32
    %114 = vector.broadcast %cst_31 : f32 to vector<16x1xf32>
    %115 = arith.divf %113, %114 : vector<16x1xf32>
    %116 = vector.broadcast %115 : vector<16x1xf32> to vector<16x32xf32>
    %117 = arith.subf %111, %116 : vector<16x32xf32>
    %118 = arith.mulf %117, %117 : vector<16x32xf32>
    %cst_32 = arith.constant dense<0.000000e+00> : vector<16xf32>
    %119 = vector.multi_reduction <add>, %118, %cst_32 [1] : vector<16x32xf32> to vector<16xf32>
    %120 = vector.shape_cast %119 : vector<16xf32> to vector<16x1xf32>
    %cst_33 = arith.constant 3.200000e+01 : f32
    %121 = vector.broadcast %cst_33 : f32 to vector<16x1xf32>
    %122 = arith.divf %120, %121 : vector<16x1xf32>
    %123 = vector.broadcast %115 : vector<16x1xf32> to vector<16x32xf32>
    %124 = arith.subf %111, %123 : vector<16x32xf32>
    %cst_34 = arith.constant 9.99999997E-7 : f32
    %125 = vector.broadcast %cst_34 : f32 to vector<16x1xf32>
    %126 = arith.addf %122, %125 : vector<16x1xf32>
    %127 = math.rsqrt %126 : vector<16x1xf32>
    %128 = vector.broadcast %127 : vector<16x1xf32> to vector<16x32xf32>
    %129 = arith.mulf %124, %128 : vector<16x32xf32>
    %130 = vector.broadcast %15 : vector<1x32xf32> to vector<16x32xf32>
    %131 = arith.mulf %129, %130 : vector<16x32xf32>
    %132 = vector.broadcast %16 : vector<1x32xf32> to vector<16x32xf32>
    %133 = arith.addf %131, %132 : vector<16x32xf32>
    %134 = arith.truncf %133 : vector<16x32xf32> to vector<16x32xbf16>
    %cst_35 = arith.constant dense<0.000000e+00> : vector<16x128xf32>
    %135 = tpu.matmul %134, %22, %cst_35 {dimension_numbers = #tpu.dot_dimension_numbers<[1], [0], [0], [1], [0, 0, 1, 1], [], []>} : vector<16x32xbf16>, vector<32x128xbf16>, vector<16x128xf32> -> vector<16x128xf32>
    %136 = vector.broadcast %24 : vector<1x128xf32> to vector<16x128xf32>
    %137 = arith.addf %135, %136 : vector<16x128xf32>
    %cst_36 = arith.constant 5.000000e-01 : f32
    %138 = vector.broadcast %cst_36 : f32 to vector<16x128xf32>
    %139 = arith.mulf %138, %137 : vector<16x128xf32>
    %cst_37 = arith.constant 0.707106769 : f32
    %140 = vector.broadcast %cst_37 : f32 to vector<16x128xf32>
    %141 = arith.mulf %137, %140 : vector<16x128xf32>
    %142 = math.erf %141 : vector<16x128xf32>
    %cst_38 = arith.constant 1.000000e+00 : f32
    %143 = vector.broadcast %cst_38 : f32 to vector<16x128xf32>
    %144 = arith.addf %143, %142 : vector<16x128xf32>
    %145 = arith.mulf %139, %144 : vector<16x128xf32>
    %146 = arith.truncf %145 : vector<16x128xf32> to vector<16x128xbf16>
    %cst_39 = arith.constant dense<0.000000e+00> : vector<16x32xf32>
    %147 = tpu.matmul %146, %26, %cst_39 {dimension_numbers = #tpu.dot_dimension_numbers<[1], [0], [0], [1], [0, 0, 1, 1], [], []>} : vector<16x128xbf16>, vector<128x32xbf16>, vector<16x32xf32> -> vector<16x32xf32>
    %148 = arith.addf %111, %147 : vector<16x32xf32>
    %149 = vector.broadcast %17 : vector<1x32xf32> to vector<16x32xf32>
    %150 = arith.addf %148, %149 : vector<16x32xf32>
    %c1 = arith.constant 1 : index
    %c0_40 = arith.constant 0 : index
    %c0_41 = arith.constant 0 : index
    %151 = vector.load %arg4[%c1, %c0_40, %c0_41] : memref<2x6x32xf32, #tpu.memory_space<vmem>>, vector<1x6x32xf32>
    %152 = vector.shape_cast %151 : vector<1x6x32xf32> to vector<6x32xf32>
    %153 = vector.extract_strided_slice %152 {offsets = [0, 0], sizes = [1, 32], strides = [1, 1]} : vector<6x32xf32> to vector<1x32xf32>
    %154 = vector.extract_strided_slice %152 {offsets = [1, 0], sizes = [1, 32], strides = [1, 1]} : vector<6x32xf32> to vector<1x32xf32>
    %155 = vector.extract_strided_slice %152 {offsets = [2, 0], sizes = [1, 32], strides = [1, 1]} : vector<6x32xf32> to vector<1x32xf32>
    %156 = vector.extract_strided_slice %152 {offsets = [3, 0], sizes = [1, 32], strides = [1, 1]} : vector<6x32xf32> to vector<1x32xf32>
    %157 = vector.extract_strided_slice %152 {offsets = [4, 0], sizes = [1, 32], strides = [1, 1]} : vector<6x32xf32> to vector<1x32xf32>
    %158 = vector.extract_strided_slice %152 {offsets = [5, 0], sizes = [1, 32], strides = [1, 1]} : vector<6x32xf32> to vector<1x32xf32>
    %c1_42 = arith.constant 1 : index
    %c0_43 = arith.constant 0 : index
    %c0_44 = arith.constant 0 : index
    %159 = vector.load %arg6[%c1_42, %c0_43, %c0_44] : memref<2x32x256xbf16, #tpu.memory_space<vmem>>, vector<1x32x256xbf16>
    %160 = vector.shape_cast %159 : vector<1x32x256xbf16> to vector<32x256xbf16>
    %161 = vector.extract_strided_slice %160 {offsets = [0, 0], sizes = [32, 96], strides = [1, 1]} : vector<32x256xbf16> to vector<32x96xbf16>
    %162 = vector.extract_strided_slice %160 {offsets = [0, 96], sizes = [32, 32], strides = [1, 1]} : vector<32x256xbf16> to vector<32x32xbf16>
    %163 = vector.extract_strided_slice %160 {offsets = [0, 128], sizes = [32, 128], strides = [1, 1]} : vector<32x256xbf16> to vector<32x128xbf16>
    %c1_45 = arith.constant 1 : index
    %c0_46 = arith.constant 0 : index
    %c0_47 = arith.constant 0 : index
    %164 = vector.load %arg5[%c1_45, %c0_46, %c0_47] : memref<2x1x128xf32, #tpu.memory_space<vmem>>, vector<1x1x128xf32>
    %165 = vector.shape_cast %164 : vector<1x1x128xf32> to vector<1x128xf32>
    %c1_48 = arith.constant 1 : index
    %c0_49 = arith.constant 0 : index
    %c0_50 = arith.constant 0 : index
    %166 = vector.load %arg7[%c1_48, %c0_49, %c0_50] : memref<2x128x32xbf16, #tpu.memory_space<vmem>>, vector<1x128x32xbf16>
    %167 = vector.shape_cast %166 : vector<1x128x32xbf16> to vector<128x32xbf16>
    %cst_51 = arith.constant dense<0.000000e+00> : vector<16xf32>
    %168 = vector.multi_reduction <add>, %150, %cst_51 [1] : vector<16x32xf32> to vector<16xf32>
    %169 = vector.shape_cast %168 : vector<16xf32> to vector<16x1xf32>
    %cst_52 = arith.constant 3.200000e+01 : f32
    %170 = vector.broadcast %cst_52 : f32 to vector<16x1xf32>
    %171 = arith.divf %169, %170 : vector<16x1xf32>
    %172 = vector.broadcast %171 : vector<16x1xf32> to vector<16x32xf32>
    %173 = arith.subf %150, %172 : vector<16x32xf32>
    %174 = arith.mulf %173, %173 : vector<16x32xf32>
    %cst_53 = arith.constant dense<0.000000e+00> : vector<16xf32>
    %175 = vector.multi_reduction <add>, %174, %cst_53 [1] : vector<16x32xf32> to vector<16xf32>
    %176 = vector.shape_cast %175 : vector<16xf32> to vector<16x1xf32>
    %cst_54 = arith.constant 3.200000e+01 : f32
    %177 = vector.broadcast %cst_54 : f32 to vector<16x1xf32>
    %178 = arith.divf %176, %177 : vector<16x1xf32>
    %179 = vector.broadcast %171 : vector<16x1xf32> to vector<16x32xf32>
    %180 = arith.subf %150, %179 : vector<16x32xf32>
    %cst_55 = arith.constant 9.99999997E-7 : f32
    %181 = vector.broadcast %cst_55 : f32 to vector<16x1xf32>
    %182 = arith.addf %178, %181 : vector<16x1xf32>
    %183 = math.rsqrt %182 : vector<16x1xf32>
    %184 = vector.broadcast %183 : vector<16x1xf32> to vector<16x32xf32>
    %185 = arith.mulf %180, %184 : vector<16x32xf32>
    %186 = vector.broadcast %153 : vector<1x32xf32> to vector<16x32xf32>
    %187 = arith.mulf %185, %186 : vector<16x32xf32>
    %188 = vector.broadcast %154 : vector<1x32xf32> to vector<16x32xf32>
    %189 = arith.addf %187, %188 : vector<16x32xf32>
    %190 = arith.truncf %189 : vector<16x32xf32> to vector<16x32xbf16>
    %cst_56 = arith.constant dense<0.000000e+00> : vector<16x96xf32>
    %191 = tpu.matmul %190, %161, %cst_56 {dimension_numbers = #tpu.dot_dimension_numbers<[1], [0], [0], [1], [0, 0, 1, 1], [], []>} : vector<16x32xbf16>, vector<32x96xbf16>, vector<16x96xf32> -> vector<16x96xf32>
    %192 = vector.extract_strided_slice %191 {offsets = [0, 0], sizes = [16, 8], strides = [1, 1]} : vector<16x96xf32> to vector<16x8xf32>
    %193 = vector.extract_strided_slice %191 {offsets = [0, 8], sizes = [16, 8], strides = [1, 1]} : vector<16x96xf32> to vector<16x8xf32>
    %194 = vector.extract_strided_slice %191 {offsets = [0, 16], sizes = [16, 8], strides = [1, 1]} : vector<16x96xf32> to vector<16x8xf32>
    %195 = vector.extract_strided_slice %191 {offsets = [0, 24], sizes = [16, 8], strides = [1, 1]} : vector<16x96xf32> to vector<16x8xf32>
    %196 = vector.shape_cast %192 : vector<16x8xf32> to vector<1x16x8xf32>
    %197 = vector.shape_cast %193 : vector<16x8xf32> to vector<1x16x8xf32>
    %198 = vector.shape_cast %194 : vector<16x8xf32> to vector<1x16x8xf32>
    %199 = vector.shape_cast %195 : vector<16x8xf32> to vector<1x16x8xf32>
    %200 = tpu.concatenate %196, %197, %198, %199 in 0 : vector<1x16x8xf32>, vector<1x16x8xf32>, vector<1x16x8xf32>, vector<1x16x8xf32> -> vector<4x16x8xf32>
    %201 = vector.shape_cast %200 : vector<4x16x8xf32> to vector<8x8x8xf32>
    %202 = arith.truncf %201 : vector<8x8x8xf32> to vector<8x8x8xbf16>
    %203 = vector.extract_strided_slice %191 {offsets = [0, 32], sizes = [16, 8], strides = [1, 1]} : vector<16x96xf32> to vector<16x8xf32>
    %204 = vector.extract_strided_slice %191 {offsets = [0, 40], sizes = [16, 8], strides = [1, 1]} : vector<16x96xf32> to vector<16x8xf32>
    %205 = vector.extract_strided_slice %191 {offsets = [0, 48], sizes = [16, 8], strides = [1, 1]} : vector<16x96xf32> to vector<16x8xf32>
    %206 = vector.extract_strided_slice %191 {offsets = [0, 56], sizes = [16, 8], strides = [1, 1]} : vector<16x96xf32> to vector<16x8xf32>
    %207 = vector.shape_cast %203 : vector<16x8xf32> to vector<1x16x8xf32>
    %208 = vector.shape_cast %204 : vector<16x8xf32> to vector<1x16x8xf32>
    %209 = vector.shape_cast %205 : vector<16x8xf32> to vector<1x16x8xf32>
    %210 = vector.shape_cast %206 : vector<16x8xf32> to vector<1x16x8xf32>
    %211 = tpu.concatenate %207, %208, %209, %210 in 0 : vector<1x16x8xf32>, vector<1x16x8xf32>, vector<1x16x8xf32>, vector<1x16x8xf32> -> vector<4x16x8xf32>
    %212 = vector.shape_cast %211 : vector<4x16x8xf32> to vector<8x8x8xf32>
    %213 = arith.truncf %212 : vector<8x8x8xf32> to vector<8x8x8xbf16>
    %214 = vector.extract_strided_slice %191 {offsets = [0, 64], sizes = [16, 8], strides = [1, 1]} : vector<16x96xf32> to vector<16x8xf32>
    %215 = vector.extract_strided_slice %191 {offsets = [0, 72], sizes = [16, 8], strides = [1, 1]} : vector<16x96xf32> to vector<16x8xf32>
    %216 = vector.extract_strided_slice %191 {offsets = [0, 80], sizes = [16, 8], strides = [1, 1]} : vector<16x96xf32> to vector<16x8xf32>
    %217 = vector.extract_strided_slice %191 {offsets = [0, 88], sizes = [16, 8], strides = [1, 1]} : vector<16x96xf32> to vector<16x8xf32>
    %218 = vector.shape_cast %214 : vector<16x8xf32> to vector<1x16x8xf32>
    %219 = vector.shape_cast %215 : vector<16x8xf32> to vector<1x16x8xf32>
    %220 = vector.shape_cast %216 : vector<16x8xf32> to vector<1x16x8xf32>
    %221 = vector.shape_cast %217 : vector<16x8xf32> to vector<1x16x8xf32>
    %222 = tpu.concatenate %218, %219, %220, %221 in 0 : vector<1x16x8xf32>, vector<1x16x8xf32>, vector<1x16x8xf32>, vector<1x16x8xf32> -> vector<4x16x8xf32>
    %223 = vector.shape_cast %222 : vector<4x16x8xf32> to vector<8x8x8xf32>
    %224 = arith.truncf %223 : vector<8x8x8xf32> to vector<8x8x8xbf16>
    "tpu.trace_start"() <{level = 10 : i32, message = "znd,zmd->znm"}> : () -> ()
    %cst_57 = arith.constant dense<0.000000e+00> : vector<8x8x8xf32>
    %225 = tpu.matmul %202, %213, %cst_57 {dimension_numbers = #tpu.dot_dimension_numbers<[2], [2], [1], [1], [0, 0, 0, 1, 1, 1], [0], [0]>} : vector<8x8x8xbf16>, vector<8x8x8xbf16>, vector<8x8x8xf32> -> vector<8x8x8xf32>
    "tpu.trace_stop"() : () -> ()
    %cst_58 = arith.constant dense<0xFF800000> : vector<8x8xf32>
    %226 = vector.multi_reduction <maximumf>, %225, %cst_58 [2] : vector<8x8x8xf32> to vector<8x8xf32>
    %227 = vector.shape_cast %226 : vector<8x8xf32> to vector<8x8x1xf32>
    %228 = vector.broadcast %227 : vector<8x8x1xf32> to vector<8x8x8xf32>
    %229 = arith.subf %225, %228 : vector<8x8x8xf32>
    %230 = math.exp %229 : vector<8x8x8xf32>
    %cst_59 = arith.constant dense<0.000000e+00> : vector<8x8xf32>
    %231 = vector.multi_reduction <add>, %230, %cst_59 [2] : vector<8x8x8xf32> to vector<8x8xf32>
    %232 = vector.shape_cast %231 : vector<8x8xf32> to vector<8x8x1xf32>
    %233 = tpu.reciprocal %232 {approx = true} : vector<8x8x1xf32> -> vector<8x8x1xf32>
    %234 = vector.broadcast %233 : vector<8x8x1xf32> to vector<8x8x8xf32>
    %235 = arith.mulf %230, %234 : vector<8x8x8xf32>
    %236 = arith.truncf %235 : vector<8x8x8xf32> to vector<8x8x8xbf16>
    "tpu.trace_start"() <{level = 10 : i32, message = "znm,zmd->znd"}> : () -> ()
    %cst_60 = arith.constant dense<0.000000e+00> : vector<8x8x8xf32>
    %237 = tpu.matmul %236, %224, %cst_60 {dimension_numbers = #tpu.dot_dimension_numbers<[2], [1], [1], [2], [0, 0, 0, 1, 1, 2], [0], [0]>} : vector<8x8x8xbf16>, vector<8x8x8xbf16>, vector<8x8x8xf32> -> vector<8x8x8xf32>
    "tpu.trace_stop"() : () -> ()
    %238 = vector.shape_cast %237 : vector<8x8x8xf32> to vector<4x16x8xf32>
    %239 = vector.extract_strided_slice %238 {offsets = [0, 0, 0], sizes = [1, 16, 8], strides = [1, 1, 1]} : vector<4x16x8xf32> to vector<1x16x8xf32>
    %240 = vector.shape_cast %239 : vector<1x16x8xf32> to vector<16x8xf32>
    %241 = vector.extract_strided_slice %238 {offsets = [1, 0, 0], sizes = [1, 16, 8], strides = [1, 1, 1]} : vector<4x16x8xf32> to vector<1x16x8xf32>
    %242 = vector.shape_cast %241 : vector<1x16x8xf32> to vector<16x8xf32>
    %243 = vector.extract_strided_slice %238 {offsets = [2, 0, 0], sizes = [1, 16, 8], strides = [1, 1, 1]} : vector<4x16x8xf32> to vector<1x16x8xf32>
    %244 = vector.shape_cast %243 : vector<1x16x8xf32> to vector<16x8xf32>
    %245 = vector.extract_strided_slice %238 {offsets = [3, 0, 0], sizes = [1, 16, 8], strides = [1, 1, 1]} : vector<4x16x8xf32> to vector<1x16x8xf32>
    %246 = vector.shape_cast %245 : vector<1x16x8xf32> to vector<16x8xf32>
    %247 = tpu.concatenate %240, %242, %244, %246 in 1 : vector<16x8xf32>, vector<16x8xf32>, vector<16x8xf32>, vector<16x8xf32> -> vector<16x32xf32>
    %248 = arith.truncf %247 : vector<16x32xf32> to vector<16x32xbf16>
    %cst_61 = arith.constant dense<0.000000e+00> : vector<16x32xf32>
    %249 = tpu.matmul %248, %162, %cst_61 {dimension_numbers = #tpu.dot_dimension_numbers<[1], [0], [0], [1], [0, 0, 1, 1], [], []>} : vector<16x32xbf16>, vector<32x32xbf16>, vector<16x32xf32> -> vector<16x32xf32>
    %250 = arith.addf %150, %249 : vector<16x32xf32>
    %251 = vector.broadcast %155 : vector<1x32xf32> to vector<16x32xf32>
    %252 = arith.addf %250, %251 : vector<16x32xf32>
    %cst_62 = arith.constant dense<0.000000e+00> : vector<16xf32>
    %253 = vector.multi_reduction <add>, %252, %cst_62 [1] : vector<16x32xf32> to vector<16xf32>
    %254 = vector.shape_cast %253 : vector<16xf32> to vector<16x1xf32>
    %cst_63 = arith.constant 3.200000e+01 : f32
    %255 = vector.broadcast %cst_63 : f32 to vector<16x1xf32>
    %256 = arith.divf %254, %255 : vector<16x1xf32>
    %257 = vector.broadcast %256 : vector<16x1xf32> to vector<16x32xf32>
    %258 = arith.subf %252, %257 : vector<16x32xf32>
    %259 = arith.mulf %258, %258 : vector<16x32xf32>
    %cst_64 = arith.constant dense<0.000000e+00> : vector<16xf32>
    %260 = vector.multi_reduction <add>, %259, %cst_64 [1] : vector<16x32xf32> to vector<16xf32>
    %261 = vector.shape_cast %260 : vector<16xf32> to vector<16x1xf32>
    %cst_65 = arith.constant 3.200000e+01 : f32
    %262 = vector.broadcast %cst_65 : f32 to vector<16x1xf32>
    %263 = arith.divf %261, %262 : vector<16x1xf32>
    %264 = vector.broadcast %256 : vector<16x1xf32> to vector<16x32xf32>
    %265 = arith.subf %252, %264 : vector<16x32xf32>
    %cst_66 = arith.constant 9.99999997E-7 : f32
    %266 = vector.broadcast %cst_66 : f32 to vector<16x1xf32>
    %267 = arith.addf %263, %266 : vector<16x1xf32>
    %268 = math.rsqrt %267 : vector<16x1xf32>
    %269 = vector.broadcast %268 : vector<16x1xf32> to vector<16x32xf32>
    %270 = arith.mulf %265, %269 : vector<16x32xf32>
    %271 = vector.broadcast %156 : vector<1x32xf32> to vector<16x32xf32>
    %272 = arith.mulf %270, %271 : vector<16x32xf32>
    %273 = vector.broadcast %157 : vector<1x32xf32> to vector<16x32xf32>
    %274 = arith.addf %272, %273 : vector<16x32xf32>
    %275 = arith.truncf %274 : vector<16x32xf32> to vector<16x32xbf16>
    %cst_67 = arith.constant dense<0.000000e+00> : vector<16x128xf32>
    %276 = tpu.matmul %275, %163, %cst_67 {dimension_numbers = #tpu.dot_dimension_numbers<[1], [0], [0], [1], [0, 0, 1, 1], [], []>} : vector<16x32xbf16>, vector<32x128xbf16>, vector<16x128xf32> -> vector<16x128xf32>
    %277 = vector.broadcast %165 : vector<1x128xf32> to vector<16x128xf32>
    %278 = arith.addf %276, %277 : vector<16x128xf32>
    %cst_68 = arith.constant 5.000000e-01 : f32
    %279 = vector.broadcast %cst_68 : f32 to vector<16x128xf32>
    %280 = arith.mulf %279, %278 : vector<16x128xf32>
    %cst_69 = arith.constant 0.707106769 : f32
    %281 = vector.broadcast %cst_69 : f32 to vector<16x128xf32>
    %282 = arith.mulf %278, %281 : vector<16x128xf32>
    %283 = math.erf %282 : vector<16x128xf32>
    %cst_70 = arith.constant 1.000000e+00 : f32
    %284 = vector.broadcast %cst_70 : f32 to vector<16x128xf32>
    %285 = arith.addf %284, %283 : vector<16x128xf32>
    %286 = arith.mulf %280, %285 : vector<16x128xf32>
    %287 = arith.truncf %286 : vector<16x128xf32> to vector<16x128xbf16>
    %cst_71 = arith.constant dense<0.000000e+00> : vector<16x32xf32>
    %288 = tpu.matmul %287, %167, %cst_71 {dimension_numbers = #tpu.dot_dimension_numbers<[1], [0], [0], [1], [0, 0, 1, 1], [], []>} : vector<16x128xbf16>, vector<128x32xbf16>, vector<16x32xf32> -> vector<16x32xf32>
    %289 = arith.addf %252, %288 : vector<16x32xf32>
    %290 = vector.broadcast %158 : vector<1x32xf32> to vector<16x32xf32>
    %291 = arith.addf %289, %290 : vector<16x32xf32>
    %c0_72 = arith.constant 0 : index
    %c0_73 = arith.constant 0 : index
    %292 = vector.load %arg8[%c0_72, %c0_73] : memref<2x32xf32, #tpu.memory_space<vmem>>, vector<1x32xf32>
    %c1_74 = arith.constant 1 : index
    %c0_75 = arith.constant 0 : index
    %293 = vector.load %arg8[%c1_74, %c0_75] : memref<2x32xf32, #tpu.memory_space<vmem>>, vector<1x32xf32>
    %cst_76 = arith.constant dense<0.000000e+00> : vector<16xf32>
    %294 = vector.multi_reduction <add>, %291, %cst_76 [1] : vector<16x32xf32> to vector<16xf32>
    %295 = vector.shape_cast %294 : vector<16xf32> to vector<16x1xf32>
    %cst_77 = arith.constant 3.200000e+01 : f32
    %296 = vector.broadcast %cst_77 : f32 to vector<16x1xf32>
    %297 = arith.divf %295, %296 : vector<16x1xf32>
    %298 = vector.broadcast %297 : vector<16x1xf32> to vector<16x32xf32>
    %299 = arith.subf %291, %298 : vector<16x32xf32>
    %300 = arith.mulf %299, %299 : vector<16x32xf32>
    %cst_78 = arith.constant dense<0.000000e+00> : vector<16xf32>
    %301 = vector.multi_reduction <add>, %300, %cst_78 [1] : vector<16x32xf32> to vector<16xf32>
    %302 = vector.shape_cast %301 : vector<16xf32> to vector<16x1xf32>
    %cst_79 = arith.constant 3.200000e+01 : f32
    %303 = vector.broadcast %cst_79 : f32 to vector<16x1xf32>
    %304 = arith.divf %302, %303 : vector<16x1xf32>
    %305 = vector.broadcast %297 : vector<16x1xf32> to vector<16x32xf32>
    %306 = arith.subf %291, %305 : vector<16x32xf32>
    %cst_80 = arith.constant 9.99999997E-7 : f32
    %307 = vector.broadcast %cst_80 : f32 to vector<16x1xf32>
    %308 = arith.addf %304, %307 : vector<16x1xf32>
    %309 = math.rsqrt %308 : vector<16x1xf32>
    %310 = vector.broadcast %309 : vector<16x1xf32> to vector<16x32xf32>
    %311 = arith.mulf %306, %310 : vector<16x32xf32>
    %312 = vector.broadcast %292 : vector<1x32xf32> to vector<16x32xf32>
    %313 = arith.mulf %311, %312 : vector<16x32xf32>
    %314 = vector.broadcast %293 : vector<1x32xf32> to vector<16x32xf32>
    %315 = arith.addf %313, %314 : vector<16x32xf32>
    %316 = vector.shape_cast %315 : vector<16x32xf32> to vector<2x8x32xf32>
    %c0_81 = arith.constant 0 : index
    %c0_82 = arith.constant 0 : index
    %c0_83 = arith.constant 0 : index
    %317 = vector.load %arg9[%c0_81, %c0_82, %c0_83] : memref<2x8x32xf32, #tpu.memory_space<vmem>>, vector<2x8x32xf32>
    tpu.vector_store %arg9[%c0_81, %c0_82, %c0_83], %316 {strides = array<i32>} : memref<2x8x32xf32, #tpu.memory_space<vmem>>, vector<2x8x32xf32>,
    return
  }
}

</mosaic_0001>

<bundles_post_ra>
// kernel: transreid_forward.1
= control target key start
LH: loop header
LB: loop body
LE: loop exit
PB: predicated region body
PF: predicated region fallthrough
CT: control target
= control target key end

     0   :  { %vm196_vm0 = vcmask 1043456   ;;  %vm221_vm1 = vcmask 261120   ;;  %v2454_v33 = vmov 32.0   ;;  %s2455_s13 = smov 112   ;;  %s2456_s14 = smov 104   ;;  %vm342_vm9 = vcmask 64512   ;;  %s3107_s1 = inlined_call_operand.vmem [shape: bf16[256,32], index: 1, kind: input, shape index: {}]   ;;  %s3108_s0 = inlined_call_operand.vmem [shape: f32[8,256], index: 0, kind: input, shape index: {}]   ;;  %s3109_s2 = inlined_call_operand.vmem [shape: f32[8,32], index: 2, kind: input, shape index: {}]   ;;  %s3110_s3 = inlined_call_operand.vmem [shape: f32[4,32], index: 3, kind: input, shape index: {}]   ;;  %s3111_s6 = inlined_call_operand.vmem [shape: bf16[2,32,256], index: 6, kind: input, shape index: {}]   ;;  %s3112_s4 = inlined_call_operand.vmem [shape: f32[2,6,32], index: 4, kind: input, shape index: {}]   ;;  %s3113_s5 = inlined_call_operand.vmem [shape: f32[2,1,128], index: 5, kind: input, shape index: {}]   ;;  %s3114_s7 = inlined_call_operand.vmem [shape: bf16[2,128,32], index: 7, kind: input, shape index: {}]   ;;  %s3115_s8 = inlined_call_operand.vmem [shape: f32[2,32], index: 8, kind: input, shape index: {}]   ;;  %s3116_s9 = inlined_call_operand.vmem [shape: f32[2,8,32], index: 9, kind: output, shape index: {}]  }
   0x1   :  { %v2263_v0 = vld [vmem:[%s3107_s1 + $0x38] sm:$0xff]  ;;  %v2262_v2 = vld [vmem:[%s3107_s1 + $0x30] sm:$0xff]  ;;  %v2261_v4 = vld [vmem:[%s3107_s1 + $0x28] sm:$0xff]  ;;  %2360 = vrcp.f32 %v2454_v33  ;;  %s2457_s15 = smov 120   ;;  %s2458_s16 = smov 96   ;;  %vm820_vm10 = vcmask 130048  }
   0x2   :  { %v2271_v1 = vld [vmem:[%s3107_s1 + $0x78] sm:$0xff]  ;;  %166 = vmatpush.bf16.msra.mxu0 %v2263_v0  ;;  %v2270_v3 = vld [vmem:[%s3107_s1 + $0x70] sm:$0xff]  ;;  %v2269_v5 = vld [vmem:[%s3107_s1 + $0x68] sm:$0xff]  ;;  %s2459_s17 = smov 64   ;;  %s2460_s18 = smov 32   ;;  %vm823_vm11 = vcmask 195584  }
   0x3   :  { %179 = vmatpush.bf16.msra.mxu1 %v2271_v1  ;;  %v2260_v6 = vld [vmem:[%s3107_s1 + $0x20] sm:$0xff]  ;;  %v2259_v8 = vld [vmem:[%s3107_s1 + $0x18] sm:$0xff]  ;;  %v2258_v10 = vld [vmem:[%s3107_s1 + $0x10] sm:$0xff]  ;;  %s2461_s19 = smov 8   ;;  %s2462_s20 = smov 16  }
   0x4   :  { %v2268_v7 = vld [vmem:[%s3107_s1 + $0x60] sm:$0xff]  ;;  %v2267_v9 = vld [vmem:[%s3107_s1 + $0x58] sm:$0xff]  ;;  %v2266_v11 = vld [vmem:[%s3107_s1 + $0x50] sm:$0xff]  ;;  %s2463_s21 = smov 24  }
   0x5   :  { %v2257_v12 = vld [vmem:[%s3107_s1 + $0x8] sm:$0xff]  ;;  %v2256_v14 = vld [vmem:[%s3107_s1] sm:$0xff]  ;;  %v2102_v50 = vld [vmem:[%s3111_s6 + $0x10] sm:$0xf] }
   0x6   :  { %167 = vmatpush.bf16.msra.mxu0 %v2262_v2  ;;  %v2265_v13 = vld [vmem:[%s3107_s1 + $0x48] sm:$0xff]  ;;  %v2264_v15 = vld [vmem:[%s3107_s1 + $0x40] sm:$0xff]  ;;  %v2275_v51 = vld [vmem:[%s3111_s6 + $0x14] sm:$0xf0] }
   0x7   :  { %180 = vmatpush.bf16.msra.mxu1 %v2270_v3  ;;  %v33_v16 = vld [vmem:[%s3108_s0] sm:$0xff]  ;;  %v34_v17 = vld [vmem:[%s3108_s0 + $0x8] sm:$0xff]  ;;  %v2361_v34 = vpop.eup %2360  ;;  %v2598_v52 = vor.u32 %v2275_v51, %v2102_v50 }
   0x8   :  { %v67_v18 = vpack.c.bf16 %v33_v16, %v33_v16  ;;  %v68_v19 = vpack.c.bf16 %v34_v17, %v34_v17  ;;  %v69_v20 = vld [vmem:[%s3109_s2] sm:$0xff]  ;;  %v229_v35 = vmul.f32 32.0, %v2361_v34  ;;  %vm233_vm2 = vweird.f32 %v2361_v34  ;;  %v2273_v54 = vld [vmem:[%s3111_s6 + $0x4] sm:$0xf0] }
   0x9   :  { %v192_v26 = vld [vmem:[%s3110_s3] sm:$0xf]  ;;  %301 = vmatpush.bf16.msra.mxu3 %v2598_v52 }
   0xa   :  { %168 = vmatpush.bf16.msra.mxu0 %v2261_v4  ;;  %v230_v36 = vsub.f32 1.0, %v229_v35  ;;  %v2098_v53 = vld [vmem:[%s3111_s6] sm:$0xf] }
   0xb   :  { %181 = vmatpush.bf16.msra.mxu1 %v2269_v5  ;;  %v2607_v56 = vor.u32 %v2273_v54, %v2098_v53 }
   0xc   :  { %v231_v37 = vmul.f32 %v2361_v34, %v230_v36 }
   0xd   :  { %302 = vmatpush.bf16.msra.mxu3 %v2607_v56 }
   0xe   :  { %169 = vmatpush.bf16.msra.mxu0 %v2260_v6  ;;  %v232_v38 = vadd.f32 %v2361_v34, %v231_v37 }
   0xf   :  { %182 = vmatpush.bf16.msra.mxu1 %v2268_v7 }
  0x10   :  { %v2584_v39 = vsel %vm233_vm2, %v2361_v34, %v232_v38 }
  0x12   :  { %170 = vmatpush.bf16.msra.mxu0 %v2259_v8 }
  0x13   :  { %183 = vmatpush.bf16.msra.mxu1 %v2267_v9  ;;  %v2615_v9 = vld [vmem:[%s3112_s4] sm:$0x3f] }
  0x14   :  { %v276_v17 = vperm.slane %v2615_v9, 1 }
  0x16   :  { %171 = vmatpush.bf16.msra.mxu0 %v2258_v10 }
  0x17   :  { %184 = vmatpush.bf16.msra.mxu1 %v2266_v11 }
  0x1a   :  { %172 = vmatpush.bf16.msra.mxu0 %v2257_v12  ;;  %v273_v12 = vperm.slane %v2615_v9, 0 }
  0x1b   :  { %185 = vmatpush.bf16.msra.mxu1 %v2265_v13 }
  0x1e   :  { %173 = vmatpush.bf16.msra.mxu0 %v2256_v14 }
  0x1f   :  { %186 = vmatpush.bf16.msra.mxu1 %v2264_v15 }
  0x21   :  { %174 = vmatmul.bf16.vlgmr.msra.gmra.mxu0 %v67_v18 }
  0x22   :  { %187 = vmatmul.bf16.vlgmr.msra.gmra.mxu1 %v68_v19 }
  0x9e   :  { %v175_v21 = vpop.f32.mrf.mxu0 }
  0x9f   :  { %v188_v22 = vpop.f32.mrf.mxu1  ;;  %v176_v23 = vadd.f32 %v175_v21, %v69_v20 }
  0xa1   :  { %v189_v24 = vadd.f32 %v188_v22, %v176_v23 }
  0xa3   :  { %v194_v25 = vrot.slane %v189_v24, 4  ;;  %v2580_v31 = vsel %vm196_vm0, %v192_v26, %v189_v24 }
  0xa4   :  { %v225_v32 = vsel %vm221_vm1, %v2580_v31, 0.0 }
  0xa5   :  { %v2575_v27 = vsel %vm196_vm0, %v192_v26, %v194_v25 }
  0xa6   :  { %v177_v28 = vpop.f32.mrf.mxu0  ;;  %v222_v30 = vsel %vm221_vm1, %v2575_v27, 0.0 }
  0xa7   :  { %v190_v29 = vpop.f32.mrf.mxu1  ;;  %223 = vadd.xlane.f32.xlu0 %v222_v30 }
  0xaf   :  { %226 = vadd.xlane.f32.xlu0 %v225_v32 }
 0x11a   :  { %v224_v40 = vpop.xlane.xlu0 %223 }
 0x11b   :  { %v235_v41 = vmul.f32 %v2584_v39, %v224_v40 }
 0x11d   :  { %v237_v42 = vsub.f32 %v2575_v27, %v235_v41 }
 0x11f   :  { %v239_v43 = vmul.f32 %v237_v42, %v237_v42 }
 0x121   :  { %v241_v44 = vsel %vm221_vm1, %v239_v43, 0.0 }
 0x122   :  { %242 = vadd.xlane.f32.xlu1 %v241_v44  ;;  %v227_v45 = vpop.xlane.xlu0 %226 }
 0x123   :  { %v236_v46 = vmul.f32 %v2584_v39, %v227_v45 }
 0x125   :  { %v238_v47 = vsub.f32 %v2580_v31, %v236_v46 }
 0x127   :  { %v240_v48 = vmul.f32 %v238_v47, %v238_v47 }
 0x129   :  { %v244_v49 = vsel %vm221_vm1, %v240_v48, 0.0 }
 0x12a   :  { %245 = vadd.xlane.f32.xlu1 %v244_v49 }
 0x195   :  { %v243_v55 = vpop.xlane.xlu1 %242 }
 0x196   :  { %v247_v57 = vmul.f32 %v243_v55, %v2584_v39 }
 0x198   :  { %v249_v58 = vadd.f32 1e-06, %v247_v57 }
 0x19a   :  { %2362 = vrsqrt.f32 %v249_v58  ;;  %vm257_vm4 = vweird.f32 %v249_v58 }
 0x19d   :  { %v246_v59 = vpop.xlane.xlu1 %245 }
 0x19e   :  { %v248_v60 = vmul.f32 %v246_v59, %v2584_v39 }
 0x1a0   :  { %v2363_v61 = vpop.eup %2362  ;;  %v250_v62 = vadd.f32 1e-06, %v248_v60 }
 0x1a1   :  { %v252_v63 = vmul.f32 %v2363_v61, %v249_v58  ;;  %vm258_vm3 = vweird.f32 %v2363_v61 }
 0x1a2   :  { %2364 = vrsqrt.f32 %v250_v62  ;;  %vm259_vm5 = vmor %vm257_vm4, %vm258_vm3  ;;  %vm267_vm7 = vweird.f32 %v250_v62 }
 0x1a3   :  { %v253_v0 = vmul.f32 %v2363_v61, %v252_v63 }
 0x1a5   :  { %v254_v1 = vmul.f32 0.5, %v253_v0 }
 0x1a7   :  { %v255_v2 = vsub.f32 1.5, %v254_v1 }
 0x1a8   :  { %v2365_v3 = vpop.eup %2364 }
 0x1a9   :  { %v256_v4 = vmul.f32 %v2363_v61, %v255_v2  ;;  %v262_v5 = vmul.f32 %v2365_v3, %v250_v62  ;;  %vm268_vm6 = vweird.f32 %v2365_v3 }
 0x1aa   :  { %vm269_vm8 = vmor %vm267_vm7, %vm268_vm6 }
 0x1ab   :  { %v263_v6 = vmul.f32 %v2365_v3, %v262_v5  ;;  %v260_v7 = vsel %vm259_vm5, %v2363_v61, %v256_v4 }
 0x1ac   :  { %v271_v11 = vmul.f32 %v260_v7, %v237_v42 }
 0x1ad   :  { %v264_v8 = vmul.f32 0.5, %v263_v6 }
 0x1ae   :  { %v274_v16 = vmul.f32 %v273_v12, %v271_v11 }
 0x1af   :  { %v265_v10 = vsub.f32 1.5, %v264_v8 }
 0x1b0   :  { %v277_v19 = vadd.f32 %v276_v17, %v274_v16 }
 0x1b1   :  { %v266_v13 = vmul.f32 %v2365_v3, %v265_v10 }
 0x1b3   :  { %v270_v14 = vsel %vm269_vm8, %v2365_v3, %v266_v13 }
 0x1b4   :  { %v272_v15 = vmul.f32 %v270_v14, %v238_v47 }
 0x1b6   :  { %v275_v18 = vmul.f32 %v273_v12, %v272_v15 }
 0x1b8   :  { %v278_v20 = vadd.f32 %v276_v17, %v275_v18 }
 0x1ba   :  { %v279_v21 = vpack.c.bf16 %v278_v20, %v277_v19 }
 0x1bc   :  { %2104 = vmatmul.msk.bf16.vlgmr.msra.gmra.mxu3 %vm221_vm1, %v279_v21 }
 0x23f   :  { %v304_v22 = vpop.f32.mrf.mxu3 }
 0x240   :  { %v329_v25 = vpack.c.bf16 %v304_v22, %v304_v22 }
 0x242   :  { %v338_v26 = vunpack.c.l.b16 %v329_v25 }
 0x244   :  { %v339_v29 = vpack.c.b16 %v338_v26, %v338_v26 }
 0x247   :  { %v306_v23 = vpop.f32.mrf.mxu3 }
 0x248   :  { %319 = vrot.lane.b32.xlu1 %v306_v23, %s2455_s13  ;;  %325 = vrot.lane.b32.xlu0 %v306_v23, %s2456_s14  ;;  %v2306_v24 = vpack.i.bf16 %v306_v23, %v304_v22  ;;  %v330_v28 = vpack.c.bf16 %v306_v23, %v306_v23 }
 0x24a   :  { %2307 = vrot.lane.b32.xlu2 %v2306_v24, %s2457_s15  ;;  %v363_v30 = vunpack.c.l.b16 %v330_v28 }
 0x24c   :  { %v2626_v32 = vpack.c.b16 %v363_v30, %v363_v30 }
 0x252   :  { %317 = vrot.lane.b32.xlu2 %v304_v22, %s2455_s13 }
 0x25a   :  { %323 = vrot.lane.b32.xlu2 %v304_v22, %s2456_s14 }
 0x262   :  { %340 = vrot.lane.b32.xlu2 %v339_v29, %s2458_s16 }
 0x26a   :  { %365 = vrot.lane.b32.xlu2 %v2626_v32, %s2458_s16 }
 0x2a4   :  { %v2308_v33 = vpop.permute.xlu2 %2307 }
 0x2a5   :  { %v2310_v34 = vunpack.i.h.bf16 %v2308_v33  ;;  %v2309_v35 = vunpack.i.l.bf16 %v2308_v33 }
 0x2a7   :  { %v332_v36 = vpack.c.bf16 %v2310_v34, %v2310_v34  ;;  %v331_v37 = vpack.c.bf16 %v2309_v35, %v2309_v35 }
 0x2a9   :  { %v411_v38 = vunpack.c.l.b16 %v332_v36  ;;  %v387_v40 = vunpack.c.l.b16 %v331_v37 }
 0x2ab   :  { %v2630_v41 = vpack.c.b16 %v387_v40, %v387_v40  ;;  %v2632_v42 = vpack.c.b16 %v411_v38, %v411_v38 }
 0x2ac   :  { %v318_v43 = vpop.permute.xlu2 %317 }
 0x2ad   :  { %v333_v44 = vpack.c.bf16 %v318_v43, %v318_v43  ;;  %389 = vrot.lane.b32.xlu0 %v2630_v41, %s2458_s16  ;;  %413 = vrot.lane.b32.xlu2 %v2632_v42, %s2458_s16 }
 0x2af   :  { %v435_v45 = vunpack.c.l.b16 %v333_v44 }
 0x2b1   :  { %v2638_v46 = vpack.c.b16 %v435_v45, %v435_v45 }
 0x2b3   :  { %437 = vrot.lane.b32.xlu1 %v2638_v46, %s2458_s16 }
 0x2b4   :  { %v324_v47 = vpop.permute.xlu2 %323 }
 0x2b5   :  { %v335_v48 = vpack.c.bf16 %v324_v47, %v324_v47 }
 0x2b7   :  { %v483_v49 = vunpack.c.l.b16 %v335_v48 }
 0x2b9   :  { %v2642_v50 = vpack.c.b16 %v483_v49, %v483_v49 }
 0x2ba   :  { %v320_v51 = vpop.permute.xlu1 %319  ;;  %v326_v53 = vpop.permute.xlu0 %325 }
 0x2bb   :  { %v334_v54 = vpack.c.bf16 %v320_v51, %v320_v51  ;;  %v336_v55 = vpack.c.bf16 %v326_v53, %v326_v53  ;;  %485 = vrot.lane.b32.xlu1 %v2642_v50, %s2458_s16 }
 0x2bc   :  { %v341_v57 = vpop.permute.xlu2 %340 }
 0x2bd   :  { %v459_v58 = vunpack.c.l.b16 %v334_v54  ;;  %v507_v59 = vunpack.c.l.b16 %v336_v55  ;;  %v347_v60 = vsel %vm342_vm9, %v341_v57, 0 }
 0x2be   :  { %356 = vmatpush.bf16.xpose.msrb.mxu3 %v347_v60 }
 0x2bf   :  { %v2647_v61 = vpack.c.b16 %v459_v58, %v459_v58  ;;  %v2649_v62 = vpack.c.b16 %v507_v59, %v507_v59 }
 0x2c1   :  { %509 = vrot.lane.b32.xlu0 %v2649_v62, %s2458_s16  ;;  %461 = vrot.lane.b32.xlu2 %v2647_v61, %s2458_s16 }
 0x2c4   :  { %v366_v63 = vpop.permute.xlu2 %365 }
 0x2c5   :  { %2105 = vmatmul.msk.bf16.vlgmr.msrb.gmra.mxu3 %vm342_vm9, %v329_v25  ;;  %v371_v0 = vsel %vm342_vm9, %v366_v63, 0 }
 0x2c6   :  { %380 = vmatpush.bf16.xpose.msra.mxu2 %v371_v0 }
 0x2c9   :  { %626 = vrot.lane.b32.xlu0 %v339_v29, %s2459_s17 }
 0x2cd   :  { %2106 = vmatmul.msk.bf16.vlgmr.msra.gmra.mxu2 %vm342_vm9, %v330_v28 }
 0x307   :  { %v414_v1 = vpop.permute.xlu2 %413 }
 0x308   :  { %v419_v2 = vsel %vm342_vm9, %v414_v1, 0 }
 0x309   :  { %428 = vmatpush.bf16.xpose.msrb.mxu2 %v419_v2 }
 0x310   :  { %2108 = vmatmul.msk.bf16.vlgmr.msrb.gmra.mxu2 %vm342_vm9, %v332_v36 }
 0x31b   :  { %v462_v3 = vpop.permute.xlu2 %461 }
 0x31c   :  { %v467_v4 = vsel %vm342_vm9, %v462_v3, 0 }
 0x31d   :  { %476 = vmatpush.bf16.xpose.msrb.mxu0 %v467_v4 }
 0x31f   :  { %v390_v5 = vpop.permute.xlu0 %389 }
 0x320   :  { %v395_v6 = vsel %vm342_vm9, %v390_v5, 0 }
 0x321   :  { %404 = vmatpush.bf16.xpose.msra.mxu3 %v395_v6 }
 0x324   :  { %2110 = vmatmul.msk.bf16.vlgmr.msrb.gmra.mxu0 %vm342_vm9, %v334_v54 }
 0x325   :  { %v438_v7 = vpop.permute.xlu1 %437 }
 0x326   :  { %v443_v8 = vsel %vm342_vm9, %v438_v7, 0 }
 0x328   :  { %2107 = vmatmul.msk.bf16.vlgmr.msra.gmra.mxu3 %vm342_vm9, %v331_v37 }
 0x329   :  { %452 = vmatpush.bf16.xpose.msrb.mxu3 %v443_v8 }
 0x32d   :  { %v486_v10 = vpop.permute.xlu1 %485 }
 0x32e   :  { %v491_v11 = vsel %vm342_vm9, %v486_v10, 0 }
 0x32f   :  { %500 = vmatpush.bf16.xpose.msrb.mxu1 %v491_v11 }
 0x333   :  { %v510_v12 = vpop.permute.xlu0 %509 }
 0x334   :  { %v515_v13 = vsel %vm342_vm9, %v510_v12, 0 }
 0x335   :  { %524 = vmatpush.bf16.xpose.msra.mxu2 %v515_v13 }
 0x336   :  { %2111 = vmatmul.msk.bf16.vlgmr.msrb.gmra.mxu1 %vm342_vm9, %v335_v48 }
 0x338   :  { %2109 = vmatmul.msk.bf16.vlgmr.msrb.gmra.mxu3 %vm342_vm9, %v333_v44 }
 0x33b   :  { %v627_v14 = vpop.permute.xlu0 %626 }
 0x33c   :  { %v632_v15 = vsel %vm196_vm0, %v627_v14, 0  ;;  %2112 = vmatmul.msk.bf16.vlgmr.msra.gmra.mxu2 %vm342_vm9, %v336_v55 }
 0x33d   :  { %641 = vmatpush.bf16.msra.mxu3 %v632_v15 }
 0x348   :  { %v358_v16 = vpop.f32.mrf.mxu3 }
 0x349   :  { %v530_v17 = vsel %vm342_vm9, %v358_v16, -inf }
 0x34a   :  { %531 = vmax.xlane.f32.xlu0 %v530_v17 }
 0x350   :  { %v360_v18 = vpop.f32.mrf.mxu3  ;;  %v382_v19 = vpop.f32.mrf.mxu2 }
 0x351   :  { %v533_v20 = vsel %vm342_vm9, %v382_v19, -inf }
 0x352   :  { %534 = vmax.xlane.f32.xlu1 %v533_v20 }
 0x358   :  { %v384_v21 = vpop.f32.mrf.mxu2 }
 0x393   :  { %v430_v22 = vpop.f32.mrf.mxu2 }
 0x394   :  { %v539_v37 = vsel %vm342_vm9, %v430_v22, -inf }
 0x39b   :  { %v432_v23 = vpop.f32.mrf.mxu2 }
 0x3a1   :  { %v478_v24 = vpop.f32.mrf.mxu0 }
 0x3a2   :  { %v545_v34 = vsel %vm342_vm9, %v478_v24, -inf }
 0x3a9   :  { %v480_v25 = vpop.f32.mrf.mxu0 }
 0x3ab   :  { %v406_v26 = vpop.f32.mrf.mxu3 }
 0x3ac   :  { %v536_v28 = vsel %vm342_vm9, %v406_v26, -inf }
 0x3ad   :  { %537 = vmax.xlane.f32.xlu0 %v536_v28 }
 0x3b3   :  { %v408_v29 = vpop.f32.mrf.mxu3  ;;  %v502_v30 = vpop.f32.mrf.mxu1 }
 0x3b4   :  { %v548_v33 = vsel %vm342_vm9, %v502_v30, -inf }
 0x3b5   :  { %549 = vmax.xlane.f32.xlu2 %v548_v33  ;;  %546 = vmax.xlane.f32.xlu0 %v545_v34 }
 0x3bb   :  { %v454_v35 = vpop.f32.mrf.mxu3  ;;  %v504_v36 = vpop.f32.mrf.mxu1 }
 0x3bc   :  { %v542_v47 = vsel %vm342_vm9, %v454_v35, -inf }
 0x3bd   :  { %v532_v38 = vpop.xlane.xlu0 %531  ;;  %540 = vmax.xlane.f32.xlu2 %v539_v37 }
 0x3be   :  { %v554_v40 = vsub.f32 %v358_v16, %v532_v38 }
 0x3bf   :  { %v2678_v43 = vpop.f32.mrf.mxu2 }
 0x3c0   :  { %v562_v44 = vmul.f32 1.442695, %v554_v40  ;;  %v551_v53 = vsel %vm342_vm9, %v2678_v43, -inf }
 0x3c2   :  { %2366 = vpow2.f32 %v562_v44 }
 0x3c3   :  { %v456_v45 = vpop.f32.mrf.mxu3 }
 0x3c5   :  { %543 = vmax.xlane.f32.xlu2 %v542_v47  ;;  %v535_v54 = vpop.xlane.xlu1 %534 }
 0x3c6   :  { %v555_v55 = vsub.f32 %v382_v19, %v535_v54 }
 0x3c7   :  { %v528_v48 = vpop.f32.mrf.mxu2 }
 0x3c8   :  { %v2367_v49 = vpop.eup %2366  ;;  %v564_v57 = vmul.f32 1.442695, %v555_v55 }
 0x3c9   :  { %668 = vrot.lane.b32.xlu0 %v2630_v41, %s2459_s17  ;;  %v578_v51 = vsel %vm342_vm9, %v2367_v49, 0.0 }
 0x3ca   :  { %579 = vadd.xlane.f32.xlu1 %v578_v51  ;;  %2368 = vpow2.f32 %v564_v57 }
 0x3d0   :  { %v2692_v41 = vpop.eup %2368 }
 0x3d1   :  { %710 = vrot.lane.b32.xlu0 %v2638_v46, %s2459_s17  ;;  %v581_v58 = vsel %vm342_vm9, %v2692_v41, 0.0 }
 0x3d2   :  { %552 = vmax.xlane.f32.xlu1 %v551_v53 }
 0x3dd   :  { %689 = vrot.lane.b32.xlu2 %v2632_v42, %s2459_s17 }
 0x3eb   :  { %647 = vrot.lane.b32.xlu1 %v2626_v32, %s2459_s17 }
 0x406   :  { %582 = vadd.xlane.f32.xlu2 %v581_v58 }
 0x420   :  { %v538_v46 = vpop.xlane.xlu0 %537 }
 0x421   :  { %v556_v59 = vsub.f32 %v406_v26, %v538_v46 }
 0x423   :  { %v566_v60 = vmul.f32 1.442695, %v556_v59 }
 0x425   :  { %2370 = vpow2.f32 %v566_v60 }
 0x428   :  { %v547_v63 = vpop.xlane.xlu0 %546  ;;  %v550_v0 = vpop.xlane.xlu2 %549 }
 0x429   :  { %v559_v42 = vsub.f32 %v478_v24, %v547_v63  ;;  %v560_v1 = vsub.f32 %v502_v30, %v550_v0 }
 0x42b   :  { %v2696_v2 = vpop.eup %2370  ;;  %v572_v32 = vmul.f32 1.442695, %v559_v42  ;;  %v574_v3 = vmul.f32 1.442695, %v560_v1 }
 0x42c   :  { %v584_v4 = vsel %vm342_vm9, %v2696_v2, 0.0 }
 0x42d   :  { %2372 = vpow2.f32 %v572_v32  ;;  %585 = vadd.xlane.f32.xlu1 %v584_v4 }
 0x42e   :  { %2374 = vpow2.f32 %v574_v3 }
 0x430   :  { %v541_v5 = vpop.xlane.xlu2 %540 }
 0x431   :  { %v557_v6 = vsub.f32 %v430_v22, %v541_v5 }
 0x433   :  { %v2700_v7 = vpop.eup %2372  ;;  %v568_v8 = vmul.f32 1.442695, %v557_v6 }
 0x434   :  { %v2702_v10 = vpop.eup %2374  ;;  %v593_v11 = vsel %vm342_vm9, %v2700_v7, 0.0 }
 0x435   :  { %2376 = vpow2.f32 %v568_v8  ;;  %594 = vadd.xlane.f32.xlu1 %v593_v11  ;;  %v596_v12 = vsel %vm342_vm9, %v2702_v10, 0.0 }
 0x436   :  { %597 = vadd.xlane.f32.xlu2 %v596_v12 }
 0x438   :  { %v544_v13 = vpop.xlane.xlu2 %543 }
 0x439   :  { %v558_v14 = vsub.f32 %v454_v35, %v544_v13 }
 0x43b   :  { %v2377_v15 = vpop.eup %2376  ;;  %v570_v16 = vmul.f32 1.442695, %v558_v14  ;;  %v669_v17 = vpop.permute.xlu0 %668 }
 0x43c   :  { %v674_v18 = vsel %vm196_vm0, %v669_v17, 0  ;;  %v587_v19 = vsel %vm342_vm9, %v2377_v15, 0.0 }
 0x43d   :  { %2378 = vpow2.f32 %v570_v16  ;;  %v580_v20 = vpop.xlane.xlu1 %579  ;;  %683 = vmatpush.bf16.msra.mxu1 %v674_v18  ;;  %588 = vadd.xlane.f32.xlu0 %v587_v19 }
 0x43e   :  { %2380 = vrcp.f32 %v580_v20 }
 0x440   :  { %v690_v21 = vpop.permute.xlu2 %689 }
 0x441   :  { %v695_v22 = vsel %vm196_vm0, %v690_v21, 0 }
 0x442   :  { %704 = vmatpush.bf16.msrb.mxu2 %v695_v22 }
 0x443   :  { %v2379_v23 = vpop.eup %2378  ;;  %v711_v24 = vpop.permute.xlu0 %710 }
 0x444   :  { %v2381_v25 = vpop.eup %2380  ;;  %v716_v26 = vsel %vm196_vm0, %v711_v24, 0  ;;  %v590_v28 = vsel %vm342_vm9, %v2379_v23, 0.0 }
 0x445   :  { %v610_v29 = vmul.f32 %v2381_v25, %v2367_v49  ;;  %v553_v30 = vpop.xlane.xlu1 %552  ;;  %725 = vmatpush.bf16.msrb.mxu3 %v716_v26  ;;  %591 = vadd.xlane.f32.xlu2 %v590_v28 }
 0x446   :  { %v561_v33 = vsub.f32 %v2678_v43, %v553_v30 }
 0x447   :  { %v618_v34 = vpack.c.bf16 %v610_v29, %v610_v29 }
 0x448   :  { %v576_v35 = vmul.f32 1.442695, %v561_v33 }
 0x449   :  { %2113 = vmatmul.msk.bf16.vlgmr.msra.gmra.mxu3 %vm342_vm9, %v618_v34 }
 0x44a   :  { %2382 = vpow2.f32 %v576_v35 }
 0x44e   :  { %773 = vrot.lane.b32.xlu1 %v2649_v62, %s2459_s17 }
 0x450   :  { %v2383_v36 = vpop.eup %2382 }
 0x451   :  { %v599_v37 = vsel %vm342_vm9, %v2383_v36, 0.0 }
 0x452   :  { %600 = vadd.xlane.f32.xlu0 %v599_v37 }
 0x456   :  { %829 = vrot.lane.b32.xlu1 %v2598_v52, %s2460_s18 }
 0x45d   :  { %v648_v38 = vpop.permute.xlu1 %647  ;;  %731 = vrot.lane.b32.xlu2 %v2647_v61, %s2459_s17 }
 0x45e   :  { %v653_v40 = vsel %vm196_vm0, %v648_v38, 0 }
 0x45f   :  { %662 = vmatpush.bf16.msra.mxu0 %v653_v40 }
 0x466   :  { %752 = vrot.lane.b32.xlu0 %v2642_v50, %s2459_s17 }
 0x479   :  { %v583_v43 = vpop.xlane.xlu2 %582 }
 0x47a   :  { %2384 = vrcp.f32 %v583_v43 }
 0x480   :  { %v2385_v44 = vpop.eup %2384 }
 0x481   :  { %v611_v45 = vmul.f32 %v2385_v44, %v2692_v41 }
 0x483   :  { %v619_v62 = vpack.c.bf16 %v611_v45, %v611_v45 }
 0x485   :  { %2114 = vmatmul.msk.bf16.vlgmr.msra.gmra.mxu0 %vm342_vm9, %v619_v62 }
 0x4a0   :  { %v586_v47 = vpop.xlane.xlu1 %585 }
 0x4a1   :  { %2386 = vrcp.f32 %v586_v47 }
 0x4a7   :  { %v2387_v48 = vpop.eup %2386 }
 0x4a8   :  { %v612_v49 = vmul.f32 %v2387_v48, %v2696_v2  ;;  %v595_v50 = vpop.xlane.xlu1 %594 }
 0x4a9   :  { %v598_v51 = vpop.xlane.xlu2 %597 }
 0x4aa   :  { %v620_v61 = vpack.c.bf16 %v612_v49, %v612_v49 }
 0x4ac   :  { %2115 = vmatmul.msk.bf16.vlgmr.msra.gmra.mxu1 %vm342_vm9, %v620_v61 }
 0x4b0   :  { %v589_v53 = vpop.xlane.xlu0 %588 }
 0x4b1   :  { %2388 = vrcp.f32 %v589_v53 }
 0x4b2   :  { %2390 = vrcp.f32 %v595_v50 }
 0x4b7   :  { %v2389_v54 = vpop.eup %2388 }
 0x4b8   :  { %v613_v55 = vmul.f32 %v2389_v54, %v2377_v15  ;;  %v592_v57 = vpop.xlane.xlu2 %591  ;;  %v2391_v58 = vpop.eup %2390  ;;  %v852_v54 = vperm.slane %v2615_v9, 2 }
 0x4b9   :  { %2392 = vrcp.f32 %v592_v57  ;;  %v615_v59 = vmul.f32 %v2391_v58, %v2700_v7 }
 0x4ba   :  { %v621_v41 = vpack.c.bf16 %v613_v55, %v613_v55 }
 0x4bb   :  { %v623_v32 = vpack.c.bf16 %v615_v59, %v615_v59 }
 0x4bc   :  { %2116 = vmatmul.msk.bf16.vlgmr.msrb.gmra.mxu2 %vm342_vm9, %v621_v41 }
 0x4bf   :  { %v2393_v46 = vpop.eup %2392 }
 0x4c0   :  { %v614_v60 = vmul.f32 %v2393_v46, %v2379_v23  ;;  %v774_v63 = vpop.permute.xlu1 %773  ;;  %v732_v0 = vpop.permute.xlu2 %731 }
 0x4c1   :  { %v779_v42 = vsel %vm196_vm0, %v774_v63, 0  ;;  %v737_v1 = vsel %vm196_vm0, %v732_v0, 0 }
 0x4c2   :  { %v622_v2 = vpack.c.bf16 %v614_v60, %v614_v60  ;;  %746 = vmatpush.bf16.msrb.mxu0 %v737_v1  ;;  %788 = vmatpush.bf16.msra.mxu2 %v779_v42 }
 0x4c4   :  { %2117 = vmatmul.msk.bf16.vlgmr.msrb.gmra.mxu3 %vm342_vm9, %v622_v2 }
 0x4c5   :  { %v601_v3 = vpop.xlane.xlu0 %600  ;;  %2118 = vmatmul.msk.bf16.vlgmr.msrb.gmra.mxu0 %vm342_vm9, %v623_v32 }
 0x4c6   :  { %2394 = vrcp.f32 %v601_v3 }
 0x4c7   :  { %2396 = vrcp.f32 %v598_v51 }
 0x4c8   :  { %v830_v34 = vpop.permute.xlu1 %829 }
 0x4c9   :  { %842 = vmatpush.bf16.msra.mxu3 %v830_v34 }
 0x4cc   :  { %v2395_v4 = vpop.eup %2394  ;;  %v643_v5 = vpop.f32.mrf.mxu3 }
 0x4cd   :  { %v617_v6 = vmul.f32 %v2395_v4, %v2383_v36  ;;  %v2397_v8 = vpop.eup %2396 }
 0x4ce   :  { %v616_v12 = vmul.f32 %v2397_v8, %v2702_v10 }
 0x4cf   :  { %v625_v7 = vpack.c.bf16 %v617_v6, %v617_v6  ;;  %v2274_v6 = vld [vmem:[%s3111_s6 + $0x14] sm:$0xf] }
 0x4d0   :  { %v624_v15 = vpack.c.bf16 %v616_v12, %v616_v12 }
 0x4d1   :  { %2120 = vmatmul.msk.bf16.vlgmr.msra.gmra.mxu2 %vm342_vm9, %v625_v7  ;;  %v2126_v7 = vld [vmem:[%s3111_s6 + $0x18] sm:$0xf0] }
 0x4d2   :  { %v2129_v8 = vor.u32 %v2274_v6, %v2126_v7 }
 0x4d4   :  { %v645_v11 = vpop.f32.mrf.mxu3  ;;  %926 = vmatpush.bf16.msra.mxu0 %v2129_v8 }
 0x4d8   :  { %v753_v13 = vpop.permute.xlu0 %752 }
 0x4d9   :  { %v758_v14 = vsel %vm196_vm0, %v753_v13, 0  ;;  %v2272_v13 = vld [vmem:[%s3111_s6 + $0x4] sm:$0xf] }
 0x4da   :  { %767 = vmatpush.bf16.msrb.mxu1 %v758_v14  ;;  %v2122_v14 = vld [vmem:[%s3111_s6 + $0x8] sm:$0xf0] }
 0x4dd   :  { %2119 = vmatmul.msk.bf16.vlgmr.msrb.gmra.mxu1 %vm342_vm9, %v624_v15 }
 0x502   :  { %v664_v16 = vpop.f32.mrf.mxu0 }
 0x50a   :  { %v666_v17 = vpop.f32.mrf.mxu0 }
 0x529   :  { %v685_v18 = vpop.f32.mrf.mxu1 }
 0x531   :  { %v687_v19 = vpop.f32.mrf.mxu1 }
 0x53f   :  { %v706_v20 = vpop.f32.mrf.mxu2 }
 0x540   :  { %v2311_v21 = vpack.i.bf16 %v706_v20, %v685_v18 }
 0x542   :  { %2312 = vrot.lane.b32.xlu0 %v2311_v21, %s2461_s19  ;;  %v748_v22 = vpop.f32.mrf.mxu0 }
 0x547   :  { %v708_v52 = vpop.f32.mrf.mxu2  ;;  %v727_v23 = vpop.f32.mrf.mxu3 }
 0x548   :  { %v2316_v10 = vpack.i.bf16 %v748_v22, %v727_v23 }
 0x54a   :  { %2317 = vrot.lane.b32.xlu2 %v2316_v10, %s2462_s20  ;;  %v750_v24 = vpop.f32.mrf.mxu0  ;;  %827 = vrot.lane.b32.xlu0 %v2607_v56, %s2460_s18 }
 0x54f   :  { %v729_v25 = vpop.f32.mrf.mxu3 }
 0x554   :  { %v790_v26 = vpop.f32.mrf.mxu2 }
 0x55a   :  { %v769_v28 = vpop.f32.mrf.mxu1 }
 0x55b   :  { %v2321_v29 = vpack.i.bf16 %v790_v26, %v769_v28 }
 0x55c   :  { %v792_v30 = vpop.f32.mrf.mxu2 }
 0x55d   :  { %2322 = vrot.lane.b32.xlu1 %v2321_v29, %s2463_s21 }
 0x562   :  { %v771_v33 = vpop.f32.mrf.mxu1 }
 0x563   :  { %v899_v33 = vperm.slane %v2615_v9, 3 }
 0x5a4   :  { %v2318_v40 = vpop.permute.xlu2 %2317 }
 0x5a5   :  { %v2320_v44 = vunpack.i.h.bf16 %v2318_v40  ;;  %v2319_v45 = vunpack.i.l.bf16 %v2318_v40 }
 0x5b4   :  { %v2313_v35 = vpop.permute.xlu0 %2312 }
 0x5b5   :  { %v2315_v37 = vunpack.i.h.bf16 %v2313_v35  ;;  %v2314_v38 = vunpack.i.l.bf16 %v2313_v35 }
 0x5b7   :  { %v818_v43 = vsel %vm342_vm9, %v643_v5, %v2314_v38  ;;  %v819_v56 = vsel %vm342_vm9, %v664_v16, %v2315_v37  ;;  %v2125_v16 = vor.u32 %v2272_v13, %v2122_v14  ;;  %v902_v37 = vperm.slane %v2615_v9, 4  ;;  %v2278_v14 = vld [vmem:[%s3114_s7 + $0x10] sm:$0xff] }
 0x5b8   :  { %v821_v49 = vsel %vm820_vm10, %v818_v43, %v2319_v45  ;;  %v822_v61 = vsel %vm820_vm10, %v819_v56, %v2320_v44 }
 0x5b9   :  { %927 = vmatpush.bf16.msra.mxu0 %v2125_v16 }
 0x5bc   :  { %v828_v36 = vpop.permute.xlu0 %827 }
 0x5bd   :  { %843 = vmatpush.bf16.msra.mxu3 %v828_v36 }
 0x5cf   :  { %v2323_v62 = vpop.permute.xlu1 %2322 }
 0x5d0   :  { %v2325_v47 = vunpack.i.h.bf16 %v2323_v62  ;;  %v2324_v48 = vunpack.i.l.bf16 %v2323_v62  ;;  %v2356_v62 = vld [vmem:[%s3113_s5] ss:$0 sm:$0xff] }
 0x5d2   :  { %v824_v51 = vsel %vm823_vm11, %v821_v49, %v2324_v48  ;;  %v825_v53 = vsel %vm823_vm11, %v822_v61, %v2325_v47  ;;  %v2283_v49 = vld [vmem:[%s3114_s7 + $0x38] sm:$0xff] }
 0x5d3   :  { %v826_v50 = vpack.c.bf16 %v825_v53, %v824_v51  ;;  %1071 = vmatpush.bf16.msra.mxu1 %v2283_v49  ;;  %v2282_v53 = vld [vmem:[%s3114_s7 + $0x30] sm:$0xff] }
 0x5d5   :  { %2121 = vmatmul.msk.bf16.vlgmr.msra.gmra.mxu3 %vm221_vm1, %v826_v50 }
 0x5d7   :  { %1072 = vmatpush.bf16.msra.mxu1 %v2282_v53 }
 0x658   :  { %v845_v55 = vpop.f32.mrf.mxu3 }
 0x659   :  { %v850_v57 = vadd.f32 %v845_v55, %v2575_v27 }
 0x65b   :  { %v2753_v41 = vadd.f32 %v852_v54, %v850_v57 }
 0x65d   :  { %v855_v58 = vsel %vm221_vm1, %v2753_v41, 0.0 }
 0x65e   :  { %856 = vadd.xlane.f32.xlu2 %v855_v58 }
 0x660   :  { %v847_v46 = vpop.f32.mrf.mxu3 }
 0x661   :  { %v851_v59 = vadd.f32 %v847_v46, %v2580_v31  ;;  %v2281_v46 = vld [vmem:[%s3114_s7 + $0x28] sm:$0xff] }
 0x662   :  { %1073 = vmatpush.bf16.msra.mxu1 %v2281_v46 }
 0x663   :  { %v2758_v60 = vadd.f32 %v852_v54, %v851_v59 }
 0x665   :  { %v858_v63 = vsel %vm221_vm1, %v2758_v60, 0.0 }
 0x666   :  { %859 = vadd.xlane.f32.xlu1 %v858_v63 }
 0x6d1   :  { %v857_v0 = vpop.xlane.xlu2 %856 }
 0x6d2   :  { %v861_v42 = vmul.f32 %v857_v0, %v2584_v39 }
 0x6d4   :  { %v863_v27 = vsub.f32 %v2753_v41, %v861_v42 }
 0x6d6   :  { %v865_v1 = vmul.f32 %v863_v27, %v863_v27 }
 0x6d8   :  { %v867_v2 = vsel %vm221_vm1, %v865_v1, 0.0 }
 0x6d9   :  { %868 = vadd.xlane.f32.xlu0 %v867_v2  ;;  %v860_v32 = vpop.xlane.xlu1 %859 }
 0x6da   :  { %v862_v3 = vmul.f32 %v860_v32, %v2584_v39 }
 0x6dc   :  { %v864_v31 = vsub.f32 %v2758_v60, %v862_v3 }
 0x6de   :  { %v866_v4 = vmul.f32 %v864_v31, %v864_v31 }
 0x6e0   :  { %v870_v5 = vsel %vm221_vm1, %v866_v4, 0.0  ;;  %v2279_v4 = vld [vmem:[%s3114_s7 + $0x18] sm:$0xff] }
 0x6e1   :  { %871 = vadd.xlane.f32.xlu2 %v870_v5 }
 0x74c   :  { %v869_v11 = vpop.xlane.xlu0 %868 }
 0x74d   :  { %v873_v12 = vmul.f32 %v869_v11, %v2584_v39 }
 0x74f   :  { %v875_v15 = vadd.f32 1e-06, %v873_v12 }
 0x751   :  { %2398 = vrsqrt.f32 %v875_v15  ;;  %vm883_vm13 = vweird.f32 %v875_v15 }
 0x754   :  { %v872_v17 = vpop.xlane.xlu2 %871 }
 0x755   :  { %v874_v18 = vmul.f32 %v872_v17, %v2584_v39 }
 0x757   :  { %v2399_v19 = vpop.eup %2398  ;;  %v876_v20 = vadd.f32 1e-06, %v874_v18 }
 0x758   :  { %v878_v21 = vmul.f32 %v2399_v19, %v875_v15  ;;  %vm884_vm12 = vweird.f32 %v2399_v19 }
 0x759   :  { %2400 = vrsqrt.f32 %v876_v20  ;;  %vm885_vm14 = vmor %vm883_vm13, %vm884_vm12  ;;  %vm893_vm2 = vweird.f32 %v876_v20 }
 0x75a   :  { %v879_v22 = vmul.f32 %v2399_v19, %v878_v21 }
 0x75c   :  { %v880_v52 = vmul.f32 0.5, %v879_v22  ;;  %v2277_v22 = vld [vmem:[%s3114_s7 + $0x8] sm:$0xff] }
 0x75e   :  { %v881_v23 = vsub.f32 1.5, %v880_v52 }
 0x75f   :  { %v2401_v10 = vpop.eup %2400 }
 0x760   :  { %v882_v24 = vmul.f32 %v2399_v19, %v881_v23  ;;  %v888_v25 = vmul.f32 %v2401_v10, %v876_v20  ;;  %vm894_vm15 = vweird.f32 %v2401_v10 }
 0x761   :  { %vm895_vm3 = vmor %vm893_vm2, %vm894_vm15 }
 0x762   :  { %v889_v26 = vmul.f32 %v2401_v10, %v888_v25  ;;  %v886_v28 = vsel %vm885_vm14, %v2399_v19, %v882_v24 }
 0x763   :  { %v897_v34 = vmul.f32 %v886_v28, %v863_v27  ;;  %v2280_v27 = vld [vmem:[%s3114_s7 + $0x20] sm:$0xff] }
 0x764   :  { %v890_v29 = vmul.f32 0.5, %v889_v26  ;;  %1074 = vmatpush.bf16.msra.mxu1 %v2280_v27  ;;  %v2276_v26 = vld [vmem:[%s3114_s7] sm:$0xff] }
 0x765   :  { %v900_v38 = vmul.f32 %v899_v33, %v897_v34 }
 0x766   :  { %v891_v30 = vsub.f32 1.5, %v890_v29 }
 0x767   :  { %v903_v56 = vadd.f32 %v902_v37, %v900_v38 }
 0x768   :  { %v892_v35 = vmul.f32 %v2401_v10, %v891_v30  ;;  %1075 = vmatpush.bf16.msra.mxu1 %v2279_v4 }
 0x76a   :  { %v896_v36 = vsel %vm895_vm3, %v2401_v10, %v892_v35 }
 0x76b   :  { %v898_v40 = vmul.f32 %v896_v36, %v864_v31 }
 0x76c   :  { %1076 = vmatpush.bf16.msra.mxu1 %v2278_v14 }
 0x76d   :  { %v901_v43 = vmul.f32 %v899_v33, %v898_v40 }
 0x76f   :  { %v904_v44 = vadd.f32 %v902_v37, %v901_v43 }
 0x770   :  { %1077 = vmatpush.bf16.msra.mxu1 %v2277_v22 }
 0x771   :  { %v905_v45 = vpack.c.bf16 %v904_v44, %v903_v56 }
 0x773   :  { %2130 = vmatmul.msk.bf16.vlgmr.msra.gmra.mxu0 %vm221_vm1, %v905_v45 }
 0x774   :  { %1078 = vmatpush.bf16.msra.mxu1 %v2276_v26 }
 0x7f0   :  { %v929_v47 = vpop.f32.mrf.mxu0 }
 0x7f1   :  { %v2788_v48 = vadd.f32 %v2356_v62, %v929_v47 }
 0x7f3   :  { %v2794_v61 = vmul.f32 0.70710677, %v2788_v48 }
 0x7f5   :  { %v938_v51 = vmul.f32 %v2794_v61, %v2794_v61 }
 0x7f7   :  { %v939_v50 = vmin.f32 %v938_v51, 16.0 }
 0x7f8   :  { %v931_v54 = vpop.f32.mrf.mxu0 }
 0x7f9   :  { %v940_v55 = vmul.f32 2.1237322e-06, %v939_v50  ;;  %v951_v57 = vmul.f32 3.8918573e-05, %v939_v50  ;;  %v2801_v58 = vadd.f32 %v2356_v62, %v931_v54 }
 0x7fb   :  { %v941_v59 = vadd.f32 0.00028619796, %v940_v55  ;;  %v952_v63 = vadd.f32 0.001143296, %v951_v57  ;;  %v2807_v0 = vmul.f32 0.70710677, %v2801_v58 }
 0x7fd   :  { %v953_v42 = vmul.f32 %v952_v63, %v939_v50  ;;  %v978_v1 = vmul.f32 %v2807_v0, %v2807_v0  ;;  %v942_v2 = vmul.f32 %v941_v59, %v939_v50 }
 0x7ff   :  { %v954_v32 = vadd.f32 0.014752088, %v953_v42  ;;  %v979_v3 = vmin.f32 %v978_v1, 16.0  ;;  %v943_v7 = vadd.f32 0.0036580483, %v942_v2 }
 0x801   :  { %v955_v31 = vmul.f32 %v954_v32, %v939_v50  ;;  %v980_v5 = vmul.f32 2.1237322e-06, %v979_v3  ;;  %v991_v6 = vmul.f32 3.8918573e-05, %v979_v3  ;;  %v944_v17 = vmul.f32 %v943_v7, %v939_v50 }
 0x803   :  { %v956_v8 = vadd.f32 0.112945676, %v955_v31  ;;  %v981_v11 = vadd.f32 0.00028619796, %v980_v5  ;;  %v992_v12 = vadd.f32 0.001143296, %v991_v6 }
 0x804   :  { %v945_v23 = vadd.f32 0.05243302, %v944_v17 }
 0x805   :  { %v957_v13 = vmul.f32 %v956_v8, %v939_v50  ;;  %v982_v15 = vmul.f32 %v981_v11, %v979_v3  ;;  %v993_v16 = vmul.f32 %v992_v12, %v979_v3  ;;  %v934_v12 = vmul.f32 0.5, %v2788_v48 }
 0x806   :  { %v946_v29 = vmul.f32 %v945_v23, %v939_v50 }
 0x807   :  { %v958_v18 = vadd.f32 0.4994258, %v957_v13  ;;  %v983_v19 = vadd.f32 0.0036580483, %v982_v15  ;;  %v994_v20 = vadd.f32 0.014752088, %v993_v16 }
 0x808   :  { %v947_v36 = vadd.f32 0.18741608, %v946_v29  ;;  %v935_v13 = vmul.f32 0.5, %v2801_v58 }
 0x809   :  { %v959_v21 = vmul.f32 %v958_v18, %v939_v50  ;;  %v995_v52 = vmul.f32 %v994_v20, %v979_v3  ;;  %v984_v24 = vmul.f32 %v983_v19, %v979_v3  ;;  %v1087_v18 = vperm.slane %v2615_v9, 5 }
 0x80a   :  { %v948_v56 = vmul.f32 %v947_v36, %v939_v50 }
 0x80b   :  { %v960_v10 = vadd.f32 1.0, %v959_v21  ;;  %v996_v25 = vadd.f32 0.112945676, %v995_v52  ;;  %v985_v30 = vadd.f32 0.05243302, %v984_v24 }
 0x80c   :  { %v949_v51 = vadd.f32 1.1283791, %v948_v56 }
 0x80d   :  { %2402 = vrcp.f32 %v960_v10  ;;  %v997_v28 = vmul.f32 %v996_v25, %v979_v3  ;;  %v986_v38 = vmul.f32 %v985_v30, %v979_v3  ;;  %v972_v45 = vand.u32 2147483648, %v960_v10  ;;  %v2193_v30 = vld [vmem:[%s3111_s6 + $0x30] sm:$0xf] }
 0x80e   :  { %v970_v47 = vand.u32 2147483647, %v960_v10  ;;  %vm966_vm5 = vweird.f32 %v960_v10  ;;  %v950_v63 = vmul.f32 %v949_v51, %v2794_v61 }
 0x80f   :  { %v998_v33 = vadd.f32 0.4994258, %v997_v28  ;;  %v987_v62 = vadd.f32 0.18741608, %v986_v38  ;;  %v973_v55 = vor.u32 1.1754944e-38, %v972_v45 }
 0x810   :  { %vm971_vm7 = vcmp.eq.f32.partialorder %v970_v47, 8.507059e+37  ;;  %v2285_v38 = vld [vmem:[%s3111_s6 + $0x24] sm:$0xf0] }
 0x811   :  { %v999_v34 = vmul.f32 %v998_v33, %v979_v3  ;;  %v988_v57 = vmul.f32 %v987_v62, %v979_v3  ;;  %v2287_v33 = vld [vmem:[%s3111_s6 + $0x34] sm:$0xf0] }
 0x813   :  { %v2403_v35 = vpop.eup %2402  ;;  %v1000_v40 = vadd.f32 1.0, %v999_v34  ;;  %v989_v50 = vadd.f32 1.1283791, %v988_v57  ;;  %v2853_v34 = vor.u32 %v2287_v33, %v2193_v30 }
 0x814   :  { %v962_v37 = vmul.f32 %v2403_v35, %v960_v10  ;;  %vm967_vm4 = vweird.f32 %v2403_v35 }
 0x815   :  { %2404 = vrcp.f32 %v1000_v40  ;;  %vm968_vm6 = vmor %vm966_vm5, %vm967_vm4  ;;  %v1012_v27 = vand.u32 2147483648, %v1000_v40  ;;  %v1010_v32 = vand.u32 2147483647, %v1000_v40  ;;  %vm1006_vm12 = vweird.f32 %v1000_v40  ;;  %1188 = vmatpush.bf16.msrb.mxu2 %v2853_v34 }
 0x816   :  { %v963_v43 = vsub.f32 1.0, %v962_v37  ;;  %v990_v6 = vmul.f32 %v989_v50, %v2807_v0  ;;  %v2189_v37 = vld [vmem:[%s3111_s6 + $0x20] sm:$0xf] }
 0x817   :  { %v1013_v4 = vor.u32 1.1754944e-38, %v1012_v27  ;;  %vm1011_vm14 = vcmp.eq.f32.partialorder %v1010_v32, 8.507059e+37 }
 0x818   :  { %v964_v44 = vmul.f32 %v2403_v35, %v963_v43  ;;  %v2863_v43 = vor.u32 %v2285_v38, %v2189_v37 }
 0x81a   :  { %v965_v49 = vadd.f32 %v2403_v35, %v964_v44  ;;  %1189 = vmatpush.bf16.msrb.mxu2 %v2863_v43 }
 0x81b   :  { %v2405_v53 = vpop.eup %2404 }
 0x81c   :  { %v969_v54 = vsel %vm968_vm6, %v2403_v35, %v965_v49  ;;  %v1002_v46 = vmul.f32 %v2405_v53, %v1000_v40  ;;  %vm1007_vm8 = vweird.f32 %v2405_v53 }
 0x81d   :  { %v974_v59 = vsel %vm971_vm7, %v973_v55, %v969_v54  ;;  %vm1008_vm13 = vmor %vm1006_vm12, %vm1007_vm8 }
 0x81e   :  { %v1003_v42 = vsub.f32 1.0, %v1002_v46  ;;  %v975_v1 = vmul.f32 %v974_v59, %v950_v63  ;;  %v2870_v59 = vld [vmem:[%s3112_s4 + $0x8] sm:$0x3f] }
 0x81f   :  { %v1160_v27 = vperm.slane %v2870_v59, 0 }
 0x820   :  { %v1004_v2 = vmul.f32 %v2405_v53, %v1003_v42  ;;  %v2131_v5 = vclamps-f32 %v975_v1, 1.0 }
 0x822   :  { %v1005_v31 = vadd.f32 %v2405_v53, %v1004_v2  ;;  %v1018_v11 = vadd.f32 1.0, %v2131_v5 }
 0x824   :  { %v1009_v3 = vsel %vm1008_vm13, %v2405_v53, %v1005_v31  ;;  %v1020_v15 = vmul.f32 %v1018_v11, %v934_v12  ;;  %v1163_v31 = vperm.slane %v2870_v59, 1 }
 0x825   :  { %v1014_v7 = vsel %vm1011_vm14, %v1013_v4, %v1009_v3 }
 0x826   :  { %v1015_v8 = vmul.f32 %v1014_v7, %v990_v6 }
 0x828   :  { %v2132_v61 = vclamps-f32 %v1015_v8, 1.0 }
 0x82a   :  { %v1019_v14 = vadd.f32 1.0, %v2132_v61 }
 0x82c   :  { %v1021_v16 = vmul.f32 %v1019_v14, %v935_v13 }
 0x82e   :  { %v1022_v17 = vpack.c.bf16 %v1021_v16, %v1020_v15 }
 0x830   :  { %1079 = vmatmul.bf16.vlgmr.msra.gmra.mxu1 %v1022_v17 }
 0x8ad   :  { %v1080_v19 = vpop.f32.mrf.mxu1 }
 0x8ae   :  { %v1085_v0 = vadd.f32 %v1080_v19, %v2753_v41 }
 0x8b0   :  { %v2832_v20 = vadd.f32 %v1087_v18, %v1085_v0 }
 0x8b2   :  { %v1116_v21 = vsel %vm221_vm1, %v2832_v20, 0.0 }
 0x8b3   :  { %1117 = vadd.xlane.f32.xlu1 %v1116_v21 }
 0x8b5   :  { %v1082_v22 = vpop.f32.mrf.mxu1 }
 0x8b6   :  { %v1086_v48 = vadd.f32 %v1082_v22, %v2758_v60 }
 0x8b8   :  { %v2837_v58 = vadd.f32 %v1087_v18, %v1086_v48 }
 0x8ba   :  { %v1119_v52 = vsel %vm221_vm1, %v2837_v58, 0.0 }
 0x8bb   :  { %1120 = vadd.xlane.f32.xlu0 %v1119_v52 }
 0x926   :  { %v1118_v23 = vpop.xlane.xlu1 %1117 }
 0x927   :  { %v1122_v9 = vmul.f32 %v1118_v23, %v2584_v39 }
 0x929   :  { %v1124_v41 = vsub.f32 %v2832_v20, %v1122_v9 }
 0x92b   :  { %v1126_v10 = vmul.f32 %v1124_v41, %v1124_v41 }
 0x92d   :  { %v1128_v24 = vsel %vm221_vm1, %v1126_v10, 0.0 }
 0x92e   :  { %1129 = vadd.xlane.f32.xlu2 %v1128_v24  ;;  %v1121_v25 = vpop.xlane.xlu0 %1120 }
 0x92f   :  { %v1123_v26 = vmul.f32 %v1121_v25, %v2584_v39 }
 0x931   :  { %v1125_v60 = vsub.f32 %v2837_v58, %v1123_v26 }
 0x933   :  { %v1127_v28 = vmul.f32 %v1125_v60, %v1125_v60 }
 0x935   :  { %v1131_v29 = vsel %vm221_vm1, %v1127_v28, 0.0 }
 0x936   :  { %1132 = vadd.xlane.f32.xlu1 %v1131_v29 }
 0x9a1   :  { %v1130_v35 = vpop.xlane.xlu2 %1129 }
 0x9a2   :  { %v1134_v36 = vmul.f32 %v1130_v35, %v2584_v39 }
 0x9a4   :  { %v1136_v40 = vadd.f32 1e-06, %v1134_v36 }
 0x9a6   :  { %2406 = vrsqrt.f32 %v1136_v40  ;;  %vm1144_vm2 = vweird.f32 %v1136_v40 }
 0x9a9   :  { %v1133_v56 = vpop.xlane.xlu1 %1132 }
 0x9aa   :  { %v1135_v44 = vmul.f32 %v1133_v56, %v2584_v39 }
 0x9ac   :  { %v2407_v45 = vpop.eup %2406  ;;  %v1137_v62 = vadd.f32 1e-06, %v1135_v44 }
 0x9ad   :  { %v1139_v47 = vmul.f32 %v2407_v45, %v1136_v40  ;;  %vm1145_vm15 = vweird.f32 %v2407_v45 }
 0x9ae   :  { %2408 = vrsqrt.f32 %v1137_v62  ;;  %vm1146_vm3 = vmor %vm1144_vm2, %vm1145_vm15  ;;  %vm1154_vm5 = vweird.f32 %v1137_v62 }
 0x9af   :  { %v1140_v49 = vmul.f32 %v2407_v45, %v1139_v47 }
 0x9b1   :  { %v1141_v51 = vmul.f32 0.5, %v1140_v49 }
 0x9b3   :  { %v1142_v53 = vsub.f32 1.5, %v1141_v51 }
 0x9b4   :  { %v2409_v54 = vpop.eup %2408 }
 0x9b5   :  { %v1143_v55 = vmul.f32 %v2407_v45, %v1142_v53  ;;  %v1149_v57 = vmul.f32 %v2409_v54, %v1137_v62  ;;  %vm1155_vm4 = vweird.f32 %v2409_v54 }
 0x9b6   :  { %vm1156_vm6 = vmor %vm1154_vm5, %vm1155_vm4 }
 0x9b7   :  { %v1150_v46 = vmul.f32 %v2409_v54, %v1149_v57  ;;  %v1147_v63 = vsel %vm1146_vm3, %v2407_v45, %v1143_v55 }
 0x9b8   :  { %v1158_v1 = vmul.f32 %v1147_v63, %v1124_v41 }
 0x9b9   :  { %v1151_v42 = vmul.f32 0.5, %v1150_v46 }
 0x9ba   :  { %v1161_v4 = vmul.f32 %v1160_v27, %v1158_v1 }
 0x9bb   :  { %v1152_v50 = vsub.f32 1.5, %v1151_v42 }
 0x9bc   :  { %v1164_v3 = vadd.f32 %v1163_v31, %v1161_v4 }
 0x9bd   :  { %v1153_v2 = vmul.f32 %v2409_v54, %v1152_v50 }
 0x9bf   :  { %v1157_v32 = vsel %vm1156_vm6, %v2409_v54, %v1153_v2 }
 0x9c0   :  { %v1159_v5 = vmul.f32 %v1157_v32, %v1125_v60 }
 0x9c2   :  { %v1162_v6 = vmul.f32 %v1160_v27, %v1159_v5 }
 0x9c4   :  { %v1165_v7 = vadd.f32 %v1163_v31, %v1162_v6 }
 0x9c6   :  { %v1166_v8 = vpack.c.bf16 %v1165_v7, %v1164_v3 }
 0x9c8   :  { %2195 = vmatmul.msk.bf16.vlgmr.msrb.gmra.mxu2 %vm221_vm1, %v1166_v8 }
 0xa4b   :  { %v1191_v11 = vpop.f32.mrf.mxu2 }
 0xa4c   :  { %v1216_v14 = vpack.c.bf16 %v1191_v11, %v1191_v11 }
 0xa4e   :  { %v1225_v16 = vunpack.c.l.b16 %v1216_v14 }
 0xa50   :  { %v2880_v18 = vpack.c.b16 %v1225_v16, %v1225_v16 }
 0xa53   :  { %v1193_v61 = vpop.f32.mrf.mxu2 }
 0xa54   :  { %v1217_v12 = vpack.c.bf16 %v1193_v61, %v1193_v61  ;;  %v2336_v13 = vpack.i.bf16 %v1193_v61, %v1191_v11 }
 0xa56   :  { %2337 = vrot.lane.b32.xlu1 %v2336_v13, %s2455_s13  ;;  %2332 = vrot.lane.b32.xlu2 %v2336_v13, %s2456_s14  ;;  %v1249_v15 = vunpack.c.l.b16 %v1217_v12 }
 0xa57   :  { %2327 = vrot.lane.b32.xlu0 %v2336_v13, %s2457_s15 }
 0xa58   :  { %v2878_v17 = vpack.c.b16 %v1249_v15, %v1249_v15 }
 0xa5e   :  { %1251 = vrot.lane.b32.xlu1 %v2878_v17, %s2458_s16 }
 0xa5f   :  { %1227 = vrot.lane.b32.xlu0 %v2880_v18, %s2458_s16 }
 0xab0   :  { %v2333_v0 = vpop.permute.xlu2 %2332 }
 0xab1   :  { %v2335_v9 = vunpack.i.h.bf16 %v2333_v0  ;;  %v2334_v24 = vunpack.i.l.bf16 %v2333_v0 }
 0xab3   :  { %v1223_v29 = vpack.c.bf16 %v2335_v9, %v2335_v9  ;;  %v1222_v36 = vpack.c.bf16 %v2334_v24, %v2334_v24 }
 0xab5   :  { %v1393_v56 = vunpack.c.l.b16 %v1223_v29  ;;  %v1369_v44 = vunpack.c.l.b16 %v1222_v36 }
 0xab7   :  { %v2897_v62 = vpack.c.b16 %v1393_v56, %v1393_v56  ;;  %v2899_v49 = vpack.c.b16 %v1369_v44, %v1369_v44 }
 0xac8   :  { %v2338_v19 = vpop.permute.xlu1 %2337 }
 0xac9   :  { %v2339_v21 = vunpack.i.l.bf16 %v2338_v19  ;;  %v2328_v22 = vpop.permute.xlu0 %2327  ;;  %v2340_v45 = vunpack.i.h.bf16 %v2338_v19 }
 0xaca   :  { %v2330_v48 = vunpack.i.h.bf16 %v2328_v22  ;;  %v2329_v52 = vunpack.i.l.bf16 %v2328_v22 }
 0xacb   :  { %v1220_v23 = vpack.c.bf16 %v2339_v21, %v2339_v21  ;;  %v1221_v47 = vpack.c.bf16 %v2340_v45, %v2340_v45 }
 0xacc   :  { %v1219_v41 = vpack.c.bf16 %v2330_v48, %v2330_v48  ;;  %v1218_v10 = vpack.c.bf16 %v2329_v52, %v2329_v52 }
 0xacd   :  { %v1321_v25 = vunpack.c.l.b16 %v1220_v23  ;;  %v1345_v51 = vunpack.c.l.b16 %v1221_v47 }
 0xace   :  { %v1297_v26 = vunpack.c.l.b16 %v1219_v41  ;;  %v1273_v60 = vunpack.c.l.b16 %v1218_v10 }
 0xacf   :  { %v2886_v28 = vpack.c.b16 %v1321_v25, %v1321_v25  ;;  %v2907_v53 = vpack.c.b16 %v1345_v51, %v1345_v51 }
 0xad0   :  { %v1252_v30 = vpop.permute.xlu1 %1251  ;;  %v2888_v33 = vpack.c.b16 %v1297_v26, %v1297_v26  ;;  %v1274_v35 = vpack.c.b16 %v1273_v60, %v1273_v60 }
 0xad1   :  { %v1228_v37 = vpop.permute.xlu0 %1227  ;;  %v1257_v38 = vsel %vm342_vm9, %v1252_v30, 0  ;;  %1323 = vrot.lane.b32.xlu1 %v2886_v28, %s2458_s16 }
 0xad2   :  { %v1233_v40 = vsel %vm342_vm9, %v1228_v37, 0  ;;  %1299 = vrot.lane.b32.xlu0 %v2888_v33, %s2458_s16  ;;  %1275 = vrot.lane.b32.xlu2 %v1274_v35, %s2458_s16 }
 0xad3   :  { %1242 = vmatpush.bf16.xpose.msrb.mxu3 %v1233_v40  ;;  %1266 = vmatpush.bf16.xpose.msrb.mxu0 %v1257_v38 }
 0xada   :  { %2196 = vmatmul.msk.bf16.vlgmr.msrb.gmra.mxu3 %vm342_vm9, %v1216_v14  ;;  %1395 = vrot.lane.b32.xlu0 %v2897_v62, %s2458_s16 }
 0xadb   :  { %1371 = vrot.lane.b32.xlu2 %v2899_v49, %s2458_s16  ;;  %2197 = vmatmul.msk.bf16.vlgmr.msrb.gmra.mxu0 %vm342_vm9, %v1217_v12 }
 0xae2   :  { %1554 = vrot.lane.b32.xlu0 %v1274_v35, %s2459_s17 }
 0xae3   :  { %1347 = vrot.lane.b32.xlu2 %v2907_v53, %s2458_s16 }
 0xb2c   :  { %v1276_v54 = vpop.permute.xlu2 %1275 }
 0xb2d   :  { %v1281_v55 = vsel %vm342_vm9, %v1276_v54, 0 }
 0xb2e   :  { %1290 = vmatpush.bf16.xpose.msra.mxu2 %v1281_v55 }
 0xb35   :  { %v1372_v57 = vpop.permute.xlu2 %1371  ;;  %2198 = vmatmul.msk.bf16.vlgmr.msra.gmra.mxu2 %vm342_vm9, %v1218_v10 }
 0xb36   :  { %v1377_v46 = vsel %vm342_vm9, %v1372_v57, 0 }
 0xb37   :  { %1386 = vmatpush.bf16.xpose.msrb.mxu2 %v1377_v46 }
 0xb3d   :  { %v1348_v63 = vpop.permute.xlu2 %1347 }
 0xb3e   :  { %v1353_v42 = vsel %vm342_vm9, %v1348_v63, 0 }
 0xb3f   :  { %1362 = vmatpush.bf16.xpose.msrb.mxu1 %v1353_v42 }
 0xb43   :  { %v1324_v50 = vpop.permute.xlu1 %1323 }
 0xb44   :  { %v1300_v27 = vpop.permute.xlu0 %1299  ;;  %v1329_v1 = vsel %vm342_vm9, %v1324_v50, 0 }
 0xb45   :  { %v1305_v2 = vsel %vm342_vm9, %v1300_v27, 0  ;;  %2202 = vmatmul.msk.bf16.vlgmr.msrb.gmra.mxu2 %vm342_vm9, %v1222_v36  ;;  %1338 = vmatpush.bf16.xpose.msra.mxu0 %v1329_v1 }
 0xb46   :  { %2201 = vmatmul.msk.bf16.vlgmr.msrb.gmra.mxu1 %vm342_vm9, %v1221_v47  ;;  %1314 = vmatpush.bf16.xpose.msra.mxu3 %v1305_v2 }
 0xb4c   :  { %v1396_v32 = vpop.permute.xlu0 %1395  ;;  %2200 = vmatmul.msk.bf16.vlgmr.msra.gmra.mxu0 %vm342_vm9, %v1220_v23 }
 0xb4d   :  { %v1401_v31 = vsel %vm342_vm9, %v1396_v32, 0  ;;  %2199 = vmatmul.msk.bf16.vlgmr.msra.gmra.mxu3 %vm342_vm9, %v1219_v41 }
 0xb4e   :  { %1410 = vmatpush.bf16.xpose.msrb.mxu3 %v1401_v31 }
 0xb54   :  { %v1555_v4 = vpop.permute.xlu0 %1554 }
 0xb55   :  { %v1560_v5 = vsel %vm196_vm0, %v1555_v4, 0 }
 0xb56   :  { %1569 = vmatpush.bf16.msra.mxu2 %v1560_v5 }
 0xb58   :  { %v1268_v6 = vpop.f32.mrf.mxu0 }
 0xb59   :  { %v1419_v3 = vsel %vm342_vm9, %v1268_v6, -inf }
 0xb5a   :  { %1420 = vmax.xlane.f32.xlu0 %v1419_v3 }
 0xb5d   :  { %v1244_v7 = vpop.f32.mrf.mxu3  ;;  %2203 = vmatmul.msk.bf16.vlgmr.msrb.gmra.mxu3 %vm342_vm9, %v1223_v29 }
 0xb5e   :  { %v1416_v8 = vsel %vm342_vm9, %v1244_v7, -inf }
 0xb5f   :  { %1417 = vmax.xlane.f32.xlu2 %v1416_v8 }
 0xb60   :  { %v1270_v11 = vpop.f32.mrf.mxu0 }
 0xb65   :  { %v1246_v61 = vpop.f32.mrf.mxu3 }
 0xbb8   :  { %v1292_v12 = vpop.f32.mrf.mxu2 }
 0xbb9   :  { %v1422_v25 = vsel %vm342_vm9, %v1292_v12, -inf }
 0xbc0   :  { %v1294_v13 = vpop.f32.mrf.mxu2 }
 0xbc3   :  { %v1364_v14 = vpop.f32.mrf.mxu1 }
 0xbc4   :  { %v1431_v15 = vsel %vm342_vm9, %v1364_v14, -inf }
 0xbc5   :  { %1432 = vmax.xlane.f32.xlu1 %v1431_v15 }
 0xbc8   :  { %v2928_v16 = vpop.f32.mrf.mxu2 }
 0xbc9   :  { %v1340_v19 = vpop.f32.mrf.mxu0  ;;  %v1434_v40 = vsel %vm342_vm9, %v2928_v16, -inf }
 0xbca   :  { %v1428_v0 = vsel %vm342_vm9, %v1340_v19, -inf }
 0xbcb   :  { %v1366_v21 = vpop.f32.mrf.mxu1  ;;  %1429 = vmax.xlane.f32.xlu0 %v1428_v0 }
 0xbcd   :  { %v1421_v22 = vpop.xlane.xlu0 %1420 }
 0xbce   :  { %v1441_v48 = vsub.f32 %v1268_v6, %v1421_v22 }
 0xbd0   :  { %v1450_v52 = vmul.f32 1.442695, %v1441_v48  ;;  %v1316_v23 = vpop.f32.mrf.mxu3  ;;  %v1390_v9 = vpop.f32.mrf.mxu2 }
 0xbd1   :  { %v1425_v41 = vsel %vm342_vm9, %v1316_v23, -inf  ;;  %v1342_v10 = vpop.f32.mrf.mxu0 }
 0xbd2   :  { %2410 = vpow2.f32 %v1450_v52  ;;  %v1418_v24 = vpop.xlane.xlu2 %1417  ;;  %1426 = vmax.xlane.f32.xlu1 %v1425_v41 }
 0xbd3   :  { %v1440_v26 = vsub.f32 %v1244_v7, %v1418_v24  ;;  %1423 = vmax.xlane.f32.xlu0 %v1422_v25 }
 0xbd5   :  { %v1448_v60 = vmul.f32 1.442695, %v1440_v26 }
 0xbd7   :  { %2412 = vpow2.f32 %v1448_v60 }
 0xbd8   :  { %v2411_v29 = vpop.eup %2410  ;;  %v1318_v30 = vpop.f32.mrf.mxu3 }
 0xbd9   :  { %v1467_v35 = vsel %vm342_vm9, %v2411_v29, 0.0 }
 0xbda   :  { %1468 = vadd.xlane.f32.xlu2 %v1467_v35 }
 0xbdd   :  { %v2413_v36 = vpop.eup %2412 }
 0xbde   :  { %v1464_v37 = vsel %vm342_vm9, %v2413_v36, 0.0 }
 0xbdf   :  { %1465 = vadd.xlane.f32.xlu1 %v1464_v37 }
 0xbe0   :  { %v2935_v38 = vpop.f32.mrf.mxu3 }
 0xbe1   :  { %v1437_v44 = vsel %vm342_vm9, %v2935_v38, -inf }
 0xbe7   :  { %1435 = vmax.xlane.f32.xlu1 %v1434_v40  ;;  %1533 = vrot.lane.b32.xlu0 %v2878_v17, %s2459_s17 }
 0xbe8   :  { %v1414_v56 = vpop.f32.mrf.mxu3 }
 0xbef   :  { %1638 = vrot.lane.b32.xlu0 %v2899_v49, %s2459_s17 }
 0xbf2   :  { %1512 = vrot.lane.b32.xlu2 %v2880_v18, %s2459_s17 }
 0xc00   :  { %1575 = vrot.lane.b32.xlu1 %v2888_v33, %s2459_s17 }
 0xc1b   :  { %1438 = vmax.xlane.f32.xlu2 %v1437_v44 }
 0xc38   :  { %v1433_v45 = vpop.xlane.xlu1 %1432 }
 0xc39   :  { %v1445_v18 = vsub.f32 %v1364_v14, %v1433_v45 }
 0xc3b   :  { %v1458_v50 = vmul.f32 1.442695, %v1445_v18 }
 0xc3e   :  { %v1430_v47 = vpop.xlane.xlu0 %1429 }
 0xc3f   :  { %v1444_v51 = vsub.f32 %v1340_v19, %v1430_v47 }
 0xc41   :  { %v1456_v54 = vmul.f32 1.442695, %v1444_v51 }
 0xc43   :  { %2414 = vpow2.f32 %v1456_v54 }
 0xc45   :  { %v1427_v17 = vpop.xlane.xlu1 %1426 }
 0xc46   :  { %v1443_v55 = vsub.f32 %v1316_v23, %v1427_v17  ;;  %v1424_v57 = vpop.xlane.xlu0 %1423 }
 0xc47   :  { %v1442_v46 = vsub.f32 %v1292_v12, %v1424_v57 }
 0xc48   :  { %v1454_v49 = vmul.f32 1.442695, %v1443_v55 }
 0xc49   :  { %v2949_v63 = vpop.eup %2414  ;;  %v1452_v42 = vmul.f32 1.442695, %v1442_v46 }
 0xc4a   :  { %2416 = vpow2.f32 %v1454_v49  ;;  %v1476_v33 = vsel %vm342_vm9, %v2949_v63, 0.0 }
 0xc4b   :  { %2418 = vpow2.f32 %v1452_v42  ;;  %1477 = vadd.xlane.f32.xlu1 %v1476_v33 }
 0xc4d   :  { %v1469_v27 = vpop.xlane.xlu2 %1468 }
 0xc4e   :  { %2420 = vrcp.f32 %v1469_v27 }
 0xc4f   :  { %2422 = vpow2.f32 %v1458_v50 }
 0xc50   :  { %v2417_v1 = vpop.eup %2416 }
 0xc51   :  { %v2419_v2 = vpop.eup %2418  ;;  %v1473_v32 = vsel %vm342_vm9, %v2417_v1, 0.0 }
 0xc52   :  { %1474 = vadd.xlane.f32.xlu0 %v1473_v32  ;;  %v1466_v31 = vpop.xlane.xlu1 %1465  ;;  %v1470_v4 = vsel %vm342_vm9, %v2419_v2, 0.0 }
 0xc53   :  { %2424 = vrcp.f32 %v1466_v31  ;;  %1471 = vadd.xlane.f32.xlu2 %v1470_v4 }
 0xc54   :  { %v2421_v5 = vpop.eup %2420 }
 0xc55   :  { %v1513_v6 = vpop.permute.xlu2 %1512  ;;  %v2956_v7 = vpop.eup %2422  ;;  %v1497_v8 = vmul.f32 %v2421_v5, %v2411_v29 }
 0xc56   :  { %v1518_v3 = vsel %vm196_vm0, %v1513_v6, 0  ;;  %v1479_v15 = vsel %vm342_vm9, %v2956_v7, 0.0 }
 0xc57   :  { %1527 = vmatpush.bf16.msrb.mxu0 %v1518_v3  ;;  %v1505_v0 = vpack.c.bf16 %v1497_v8, %v1497_v8 }
 0xc59   :  { %v2425_v11 = vpop.eup %2424  ;;  %v1534_v61 = vpop.permute.xlu0 %1533 }
 0xc5a   :  { %v1496_v12 = vmul.f32 %v2425_v11, %v2413_v36  ;;  %v1539_v13 = vsel %vm196_vm0, %v1534_v61, 0  ;;  %v1436_v14 = vpop.xlane.xlu1 %1435 }
 0xc5b   :  { %v1446_v19 = vsub.f32 %v2928_v16, %v1436_v14  ;;  %1548 = vmatpush.bf16.msra.mxu1 %v1539_v13  ;;  %1480 = vadd.xlane.f32.xlu2 %v1479_v15 }
 0xc5c   :  { %v1504_v21 = vpack.c.bf16 %v1496_v12, %v1496_v12 }
 0xc5d   :  { %v1460_v22 = vmul.f32 1.442695, %v1446_v19 }
 0xc5e   :  { %2204 = vmatmul.msk.bf16.vlgmr.msrb.gmra.mxu0 %vm342_vm9, %v1504_v21  ;;  %2205 = vmatmul.msk.bf16.vlgmr.msra.gmra.mxu1 %vm342_vm9, %v1505_v0 }
 0xc5f   :  { %2426 = vpow2.f32 %v1460_v22 }
 0xc61   :  { %v1639_v48 = vpop.permute.xlu0 %1638 }
 0xc62   :  { %v1644_v52 = vsel %vm196_vm0, %v1639_v48, 0 }
 0xc63   :  { %1653 = vmatpush.bf16.msrb.mxu2 %v1644_v52 }
 0xc64   :  { %1659 = vrot.lane.b32.xlu1 %v2897_v62, %s2459_s17 }
 0xc65   :  { %v2427_v23 = vpop.eup %2426 }
 0xc66   :  { %v1482_v16 = vsel %vm342_vm9, %v2427_v23, 0.0 }
 0xc67   :  { %1483 = vadd.xlane.f32.xlu0 %v1482_v16 }
 0xc6c   :  { %1713 = vrot.lane.b32.xlu1 %v2853_v34, %s2460_s18 }
 0xc72   :  { %v1576_v9 = vpop.permute.xlu1 %1575 }
 0xc73   :  { %v1581_v41 = vsel %vm196_vm0, %v1576_v9, 0 }
 0xc74   :  { %1590 = vmatpush.bf16.msra.mxu3 %v1581_v41 }
 0xc7b   :  { %1617 = vrot.lane.b32.xlu0 %v2907_v53, %s2459_s17 }
 0xc8e   :  { %v1439_v10 = vpop.xlane.xlu2 %1438 }
 0xc8f   :  { %v1447_v24 = vsub.f32 %v2935_v38, %v1439_v10 }
 0xc91   :  { %v1462_v25 = vmul.f32 1.442695, %v1447_v24 }
 0xc93   :  { %2428 = vpow2.f32 %v1462_v25 }
 0xc99   :  { %v2429_v62 = vpop.eup %2428 }
 0xc9a   :  { %v1485_v26 = vsel %vm342_vm9, %v2429_v62, 0.0 }
 0xc9b   :  { %1486 = vadd.xlane.f32.xlu2 %v1485_v26 }
 0xcb3   :  { %1596 = vrot.lane.b32.xlu2 %v2886_v28, %s2459_s17 }
 0xcbe   :  { %v1478_v53 = vpop.xlane.xlu1 %1477 }
 0xcc5   :  { %v1475_v34 = vpop.xlane.xlu0 %1474 }
 0xcc6   :  { %2430 = vrcp.f32 %v1475_v34  ;;  %v1472_v60 = vpop.xlane.xlu2 %1471 }
 0xcc7   :  { %2432 = vrcp.f32 %v1472_v60 }
 0xccc   :  { %v2431_v29 = vpop.eup %2430 }
 0xccd   :  { %v2433_v30 = vpop.eup %2432  ;;  %v1499_v35 = vmul.f32 %v2431_v29, %v2417_v1 }
 0xcce   :  { %v1498_v36 = vmul.f32 %v2433_v30, %v2419_v2  ;;  %v1481_v47 = vpop.xlane.xlu2 %1480 }
 0xccf   :  { %v1507_v37 = vpack.c.bf16 %v1499_v35, %v1499_v35 }
 0xcd0   :  { %v1506_v38 = vpack.c.bf16 %v1498_v36, %v1498_v36 }
 0xcd1   :  { %2207 = vmatmul.msk.bf16.vlgmr.msra.gmra.mxu3 %vm342_vm9, %v1507_v37  ;;  %v1736_v37 = vperm.slane %v2870_v59, 2 }
 0xcd2   :  { %2206 = vmatmul.msk.bf16.vlgmr.msra.gmra.mxu2 %vm342_vm9, %v1506_v38 }
 0xcd6   :  { %v1660_v40 = vpop.permute.xlu1 %1659 }
 0xcd7   :  { %v1665_v56 = vsel %vm196_vm0, %v1660_v40, 0 }
 0xcd8   :  { %1674 = vmatpush.bf16.msrb.mxu3 %v1665_v56 }
 0xcda   :  { %v1484_v28 = vpop.xlane.xlu0 %1483 }
 0xcdb   :  { %2434 = vrcp.f32 %v1484_v28  ;;  %v2980_v44 = vpop.f32.mrf.mxu0  ;;  %v1550_v45 = vpop.f32.mrf.mxu1 }
 0xcdc   :  { %2436 = vrcp.f32 %v1481_v47 }
 0xcdd   :  { %2438 = vrcp.f32 %v1478_v53 }
 0xcde   :  { %v1714_v52 = vpop.permute.xlu1 %1713 }
 0xce1   :  { %v2435_v51 = vpop.eup %2434 }
 0xce2   :  { %v1502_v54 = vmul.f32 %v2435_v51, %v2427_v23  ;;  %v2437_v46 = vpop.eup %2436 }
 0xce3   :  { %v1531_v17 = vpop.f32.mrf.mxu0  ;;  %v1552_v55 = vpop.f32.mrf.mxu1  ;;  %v1501_v49 = vmul.f32 %v2437_v46, %v2956_v7 }
 0xce4   :  { %v1510_v57 = vpack.c.bf16 %v1502_v54, %v1502_v54  ;;  %v2439_v27 = vpop.eup %2438 }
 0xce5   :  { %v1509_v33 = vpack.c.bf16 %v1501_v49, %v1501_v49  ;;  %v1500_v2 = vmul.f32 %v2439_v27, %v2949_v63 }
 0xce6   :  { %2210 = vmatmul.msk.bf16.vlgmr.msrb.gmra.mxu2 %vm342_vm9, %v1510_v57 }
 0xce7   :  { %v1508_v6 = vpack.c.bf16 %v1500_v2, %v1500_v2 }
 0xced   :  { %v1618_v18 = vpop.permute.xlu0 %1617 }
 0xcee   :  { %v1623_v42 = vsel %vm196_vm0, %v1618_v18, 0 }
 0xcef   :  { %1632 = vmatpush.bf16.msrb.mxu1 %v1623_v42 }
 0xcf2   :  { %2209 = vmatmul.msk.bf16.vlgmr.msrb.gmra.mxu1 %vm342_vm9, %v1509_v33  ;;  %v2286_v33 = vld [vmem:[%s3111_s6 + $0x34] sm:$0xf] }
 0xd0e   :  { %v1487_v50 = vpop.xlane.xlu2 %1486 }
 0xd0f   :  { %2440 = vrcp.f32 %v1487_v50  ;;  %v2217_v50 = vld [vmem:[%s3111_s6 + $0x38] sm:$0xf0] }
 0xd10   :  { %v2220_v27 = vor.u32 %v2286_v33, %v2217_v50 }
 0xd12   :  { %1810 = vmatpush.bf16.msra.mxu1 %v2220_v27 }
 0xd15   :  { %v2441_v1 = vpop.eup %2440 }
 0xd16   :  { %v1503_v32 = vmul.f32 %v2441_v1, %v2429_v62  ;;  %v1597_v31 = vpop.permute.xlu2 %1596 }
 0xd17   :  { %v1602_v4 = vsel %vm196_vm0, %v1597_v31, 0  ;;  %v2213_v31 = vld [vmem:[%s3111_s6 + $0x28] sm:$0xf0] }
 0xd18   :  { %v1511_v5 = vpack.c.bf16 %v1503_v32, %v1503_v32  ;;  %1611 = vmatpush.bf16.msra.mxu0 %v1602_v4  ;;  %v2284_v32 = vld [vmem:[%s3111_s6 + $0x24] sm:$0xf] }
 0xd19   :  { %v2216_v4 = vor.u32 %v2284_v32, %v2213_v31  ;;  %v2290_v31 = vld [vmem:[%s3114_s7 + $0x50] sm:$0xff] }
 0xd1a   :  { %2211 = vmatmul.msk.bf16.vlgmr.msrb.gmra.mxu3 %vm342_vm9, %v1511_v5 }
 0xd1b   :  { %2208 = vmatmul.msk.bf16.vlgmr.msra.gmra.mxu0 %vm342_vm9, %v1508_v6  ;;  %1811 = vmatpush.bf16.msra.mxu1 %v2216_v4 }
 0xd1c   :  { %1726 = vmatpush.bf16.msrb.mxu0 %v1714_v52 }
 0xd54   :  { %v1592_v3 = vpop.f32.mrf.mxu3 }
 0xd55   :  { %v1571_v7 = vpop.f32.mrf.mxu2 }
 0xd56   :  { %v2346_v8 = vpack.i.bf16 %v1592_v3, %v1571_v7 }
 0xd58   :  { %2347 = vrot.lane.b32.xlu0 %v2346_v8, %s2461_s19 }
 0xd5c   :  { %v1594_v11 = vpop.f32.mrf.mxu3 }
 0xd5d   :  { %v1573_v61 = vpop.f32.mrf.mxu2 }
 0xd60   :  { %1711 = vrot.lane.b32.xlu0 %v2863_v43, %s2460_s18 }
 0xd69   :  { %v1655_v63 = vpop.f32.mrf.mxu2 }
 0xd6f   :  { %v1634_v12 = vpop.f32.mrf.mxu1 }
 0xd71   :  { %v1657_v13 = vpop.f32.mrf.mxu2 }
 0xd77   :  { %v1636_v14 = vpop.f32.mrf.mxu1 }
 0xd98   :  { %v1613_v15 = vpop.f32.mrf.mxu0 }
 0xd99   :  { %v2341_v19 = vpack.i.bf16 %v1634_v12, %v1613_v15 }
 0xd9b   :  { %2342 = vrot.lane.b32.xlu2 %v2341_v19, %s2462_s20 }
 0xd9d   :  { %v1676_v0 = vpop.f32.mrf.mxu3 }
 0xd9e   :  { %v2351_v21 = vpack.i.bf16 %v1676_v0, %v1655_v63 }
 0xda0   :  { %v1615_v22 = vpop.f32.mrf.mxu0  ;;  %2352 = vrot.lane.b32.xlu1 %v2351_v21, %s2463_s21 }
 0xda5   :  { %v1678_v48 = vpop.f32.mrf.mxu3 }
 0xda6   :  { %v1783_v48 = vperm.slane %v2870_v59, 3 }
 0xdca   :  { %v2348_v23 = vpop.permute.xlu0 %2347 }
 0xdcb   :  { %v2350_v9 = vunpack.i.h.bf16 %v2348_v23  ;;  %v2349_v41 = vunpack.i.l.bf16 %v2348_v23 }
 0xdcd   :  { %v1705_v62 = vsel %vm342_vm9, %v1550_v45, %v2350_v9  ;;  %v1704_v26 = vsel %vm342_vm9, %v2980_v44, %v2349_v41 }
 0xdd2   :  { %v1712_v16 = vpop.permute.xlu0 %1711 }
 0xdd3   :  { %1727 = vmatpush.bf16.msrb.mxu0 %v1712_v16 }
 0xdf5   :  { %v2343_v43 = vpop.permute.xlu2 %2342 }
 0xdf6   :  { %v2345_v10 = vunpack.i.h.bf16 %v2343_v43  ;;  %v2344_v24 = vunpack.i.l.bf16 %v2343_v43  ;;  %v1786_v43 = vperm.slane %v2870_v59, 4 }
 0xdf8   :  { %v1707_v29 = vsel %vm820_vm10, %v1705_v62, %v2345_v10  ;;  %v1706_v30 = vsel %vm820_vm10, %v1704_v26, %v2344_v24  ;;  %v2357_v26 = vld [vmem:[%s3113_s5 + $0x1] ss:$0 sm:$0xff] }
 0xe12   :  { %v2353_v25 = vpop.permute.xlu1 %2352 }
 0xe13   :  { %v2355_v34 = vunpack.i.h.bf16 %v2353_v25  ;;  %v2354_v60 = vunpack.i.l.bf16 %v2353_v25 }
 0xe15   :  { %v1709_v35 = vsel %vm823_vm11, %v1707_v29, %v2355_v34  ;;  %v1708_v53 = vsel %vm823_vm11, %v1706_v30, %v2354_v60  ;;  %v2295_v29 = vld [vmem:[%s3114_s7 + $0x78] sm:$0xff] }
 0xe16   :  { %v1710_v36 = vpack.c.bf16 %v1709_v35, %v1708_v53  ;;  %1955 = vmatpush.bf16.msra.mxu2 %v2295_v29  ;;  %v2294_v53 = vld [vmem:[%s3114_s7 + $0x70] sm:$0xff] }
 0xe18   :  { %2212 = vmatmul.msk.bf16.vlgmr.msrb.gmra.mxu0 %vm221_vm1, %v1710_v36 }
 0xe1a   :  { %1956 = vmatpush.bf16.msra.mxu2 %v2294_v53 }
 0xe95   :  { %v1729_v38 = vpop.f32.mrf.mxu0 }
 0xe96   :  { %v1734_v40 = vadd.f32 %v1729_v38, %v2832_v20 }
 0xe98   :  { %v3005_v56 = vadd.f32 %v1736_v37, %v1734_v40 }
 0xe9a   :  { %v1739_v28 = vsel %vm221_vm1, %v3005_v56, 0.0 }
 0xe9b   :  { %1740 = vadd.xlane.f32.xlu2 %v1739_v28 }
 0xe9d   :  { %v1731_v44 = vpop.f32.mrf.mxu0 }
 0xe9e   :  { %v1735_v45 = vadd.f32 %v1731_v44, %v2837_v58  ;;  %v2293_v44 = vld [vmem:[%s3114_s7 + $0x68] sm:$0xff] }
 0xe9f   :  { %1957 = vmatpush.bf16.msra.mxu2 %v2293_v44 }
 0xea0   :  { %v3010_v47 = vadd.f32 %v1736_v37, %v1735_v45 }
 0xea2   :  { %v1742_v51 = vsel %vm221_vm1, %v3010_v47, 0.0 }
 0xea3   :  { %1743 = vadd.xlane.f32.xlu1 %v1742_v51 }
 0xf0e   :  { %v1741_v54 = vpop.xlane.xlu2 %1740 }
 0xf0f   :  { %v1745_v17 = vmul.f32 %v1741_v54, %v2584_v39 }
 0xf11   :  { %v1747_v20 = vsub.f32 %v3005_v56, %v1745_v17 }
 0xf13   :  { %v1749_v55 = vmul.f32 %v1747_v20, %v1747_v20 }
 0xf15   :  { %v1751_v57 = vsel %vm221_vm1, %v1749_v55, 0.0 }
 0xf16   :  { %1752 = vadd.xlane.f32.xlu0 %v1751_v57  ;;  %v1744_v46 = vpop.xlane.xlu1 %1743 }
 0xf17   :  { %v1746_v49 = vmul.f32 %v1744_v46, %v2584_v39 }
 0xf19   :  { %v1748_v58 = vsub.f32 %v3010_v47, %v1746_v49 }
 0xf1b   :  { %v1750_v18 = vmul.f32 %v1748_v58, %v1748_v58 }
 0xf1d   :  { %v1754_v42 = vsel %vm221_vm1, %v1750_v18, 0.0  ;;  %v2291_v18 = vld [vmem:[%s3114_s7 + $0x58] sm:$0xff] }
 0xf1e   :  { %1755 = vadd.xlane.f32.xlu2 %v1754_v42 }
 0xf89   :  { %v1753_v1 = vpop.xlane.xlu0 %1752 }
 0xf8a   :  { %v1757_v2 = vmul.f32 %v1753_v1, %v2584_v39 }
 0xf8c   :  { %v1759_v5 = vadd.f32 1e-06, %v1757_v2 }
 0xf8e   :  { %2442 = vrsqrt.f32 %v1759_v5  ;;  %vm1767_vm9 = vweird.f32 %v1759_v5 }
 0xf91   :  { %v1756_v6 = vpop.xlane.xlu2 %1755 }
 0xf92   :  { %v1758_v3 = vmul.f32 %v1756_v6, %v2584_v39 }
 0xf94   :  { %v2443_v7 = vpop.eup %2442  ;;  %v1760_v8 = vadd.f32 1e-06, %v1758_v3 }
 0xf95   :  { %v1762_v11 = vmul.f32 %v2443_v7, %v1759_v5  ;;  %vm1768_vm0 = vweird.f32 %v2443_v7 }
 0xf96   :  { %2444 = vrsqrt.f32 %v1760_v8  ;;  %vm1769_vm10 = vmor %vm1767_vm9, %vm1768_vm0  ;;  %vm1777_vm7 = vweird.f32 %v1760_v8 }
 0xf97   :  { %v1763_v61 = vmul.f32 %v2443_v7, %v1762_v11 }
 0xf99   :  { %v1764_v63 = vmul.f32 0.5, %v1763_v61  ;;  %v2289_v61 = vld [vmem:[%s3114_s7 + $0x48] sm:$0xff] }
 0xf9b   :  { %v1765_v12 = vsub.f32 1.5, %v1764_v63 }
 0xf9c   :  { %v2445_v13 = vpop.eup %2444 }
 0xf9d   :  { %v1766_v14 = vmul.f32 %v2443_v7, %v1765_v12  ;;  %v1772_v15 = vmul.f32 %v2445_v13, %v1760_v8  ;;  %vm1778_vm11 = vweird.f32 %v2445_v13 }
 0xf9e   :  { %vm1779_vm8 = vmor %vm1777_vm7, %vm1778_vm11 }
 0xf9f   :  { %v1773_v19 = vmul.f32 %v2445_v13, %v1772_v15  ;;  %v1770_v0 = vsel %vm1769_vm10, %v2443_v7, %v1766_v14 }
 0xfa0   :  { %v1781_v52 = vmul.f32 %v1770_v0, %v1747_v20  ;;  %v2292_v20 = vld [vmem:[%s3114_s7 + $0x60] sm:$0xff] }
 0xfa1   :  { %v1774_v21 = vmul.f32 0.5, %v1773_v19  ;;  %1958 = vmatpush.bf16.msra.mxu2 %v2292_v20  ;;  %v2288_v19 = vld [vmem:[%s3114_s7 + $0x40] sm:$0xff] }
 0xfa2   :  { %v1784_v9 = vmul.f32 %v1783_v48, %v1781_v52 }
 0xfa3   :  { %v1775_v22 = vsub.f32 1.5, %v1774_v21 }
 0xfa4   :  { %v1787_v24 = vadd.f32 %v1786_v43, %v1784_v9 }
 0xfa5   :  { %v1776_v23 = vmul.f32 %v2445_v13, %v1775_v22  ;;  %1959 = vmatpush.bf16.msra.mxu2 %v2291_v18 }
 0xfa7   :  { %v1780_v16 = vsel %vm1779_vm8, %v2445_v13, %v1776_v23 }
 0xfa8   :  { %v1782_v41 = vmul.f32 %v1780_v16, %v1748_v58 }
 0xfa9   :  { %1960 = vmatpush.bf16.msra.mxu2 %v2290_v31 }
 0xfaa   :  { %v1785_v10 = vmul.f32 %v1783_v48, %v1782_v41 }
 0xfac   :  { %v1788_v25 = vadd.f32 %v1786_v43, %v1785_v10 }
 0xfad   :  { %1961 = vmatpush.bf16.msra.mxu2 %v2289_v61 }
 0xfae   :  { %v1789_v62 = vpack.c.bf16 %v1788_v25, %v1787_v24 }
 0xfb0   :  { %2221 = vmatmul.msk.bf16.vlgmr.msra.gmra.mxu1 %vm221_vm1, %v1789_v62 }
 0xfb1   :  { %1962 = vmatpush.bf16.msra.mxu2 %v2288_v19 }
0x102d   :  { %v1813_v34 = vpop.f32.mrf.mxu1 }
0x102e   :  { %v3040_v60 = vadd.f32 %v2357_v26, %v1813_v34 }
0x1030   :  { %v3046_v30 = vmul.f32 0.70710677, %v3040_v60 }
0x1032   :  { %v1822_v35 = vmul.f32 %v3046_v30, %v3046_v30 }
0x1034   :  { %v1823_v36 = vmin.f32 %v1822_v35, 16.0 }
0x1035   :  { %v1815_v37 = vpop.f32.mrf.mxu1 }
0x1036   :  { %v1824_v38 = vmul.f32 2.1237322e-06, %v1823_v36  ;;  %v1835_v40 = vmul.f32 3.8918573e-05, %v1823_v36  ;;  %v3053_v28 = vadd.f32 %v2357_v26, %v1815_v37 }
0x1038   :  { %v1825_v45 = vadd.f32 0.00028619796, %v1824_v38  ;;  %v1836_v51 = vadd.f32 0.001143296, %v1835_v40  ;;  %v3059_v54 = vmul.f32 0.70710677, %v3053_v28 }
0x103a   :  { %v1837_v17 = vmul.f32 %v1836_v51, %v1823_v36  ;;  %v1862_v55 = vmul.f32 %v3059_v54, %v3059_v54  ;;  %v1826_v57 = vmul.f32 %v1825_v45, %v1823_v36 }
0x103c   :  { %v1838_v46 = vadd.f32 0.014752088, %v1837_v17  ;;  %v1863_v49 = vmin.f32 %v1862_v55, 16.0  ;;  %v1827_v50 = vadd.f32 0.0036580483, %v1826_v57 }
0x103e   :  { %v1839_v58 = vmul.f32 %v1838_v46, %v1823_v36  ;;  %v1864_v42 = vmul.f32 2.1237322e-06, %v1863_v49  ;;  %v1875_v33 = vmul.f32 3.8918573e-05, %v1863_v49  ;;  %v1828_v6 = vmul.f32 %v1827_v50, %v1823_v36 }
0x1040   :  { %v1840_v27 = vadd.f32 0.112945676, %v1839_v58  ;;  %v1865_v1 = vadd.f32 0.00028619796, %v1864_v42  ;;  %v1876_v2 = vadd.f32 0.001143296, %v1875_v33 }
0x1041   :  { %v1829_v12 = vadd.f32 0.05243302, %v1828_v6 }
0x1042   :  { %v1841_v32 = vmul.f32 %v1840_v27, %v1823_v36  ;;  %v1866_v4 = vmul.f32 %v1865_v1, %v1863_v49  ;;  %v1877_v5 = vmul.f32 %v1876_v2, %v1863_v49  ;;  %v1818_v2 = vmul.f32 0.5, %v3040_v60 }
0x1043   :  { %v1830_v21 = vmul.f32 %v1829_v12, %v1823_v36 }
0x1044   :  { %v1842_v3 = vadd.f32 0.4994258, %v1841_v32  ;;  %v1867_v7 = vadd.f32 0.0036580483, %v1866_v4  ;;  %v1878_v8 = vadd.f32 0.014752088, %v1877_v5 }
0x1045   :  { %v1831_v16 = vadd.f32 0.18741608, %v1830_v21  ;;  %v1819_v32 = vmul.f32 0.5, %v3053_v28 }
0x1046   :  { %v1843_v11 = vmul.f32 %v1842_v3, %v1823_v36  ;;  %v1879_v63 = vmul.f32 %v1878_v8, %v1863_v49  ;;  %v1868_v14 = vmul.f32 %v1867_v7, %v1863_v49  ;;  %v1971_v3 = vperm.slane %v2870_v59, 5 }
0x1047   :  { %v1832_v24 = vmul.f32 %v1831_v16, %v1823_v36 }
0x1048   :  { %v1844_v13 = vadd.f32 1.0, %v1843_v11  ;;  %v1880_v15 = vadd.f32 0.112945676, %v1879_v63  ;;  %v1869_v22 = vadd.f32 0.05243302, %v1868_v14 }
0x1049   :  { %v1833_v35 = vadd.f32 1.1283791, %v1832_v24 }
0x104a   :  { %2446 = vrcp.f32 %v1844_v13  ;;  %v1881_v0 = vmul.f32 %v1880_v15, %v1863_v49  ;;  %v1870_v9 = vmul.f32 %v1869_v22, %v1863_v49  ;;  %v1856_v62 = vand.u32 2147483648, %v1844_v13 }
0x104b   :  { %v1854_v34 = vand.u32 2147483647, %v1844_v13  ;;  %vm1850_vm13 = vweird.f32 %v1844_v13  ;;  %v1834_v51 = vmul.f32 %v1833_v35, %v3046_v30 }
0x104c   :  { %v1882_v48 = vadd.f32 0.4994258, %v1881_v0  ;;  %v1871_v26 = vadd.f32 0.18741608, %v1870_v9  ;;  %v1857_v38 = vor.u32 1.1754944e-38, %v1856_v62 }
0x104d   :  { %vm1855_vm15 = vcmp.eq.f32.partialorder %v1854_v34, 8.507059e+37 }
0x104e   :  { %v1883_v52 = vmul.f32 %v1882_v48, %v1863_v49  ;;  %v1872_v40 = vmul.f32 %v1871_v26, %v1863_v49 }
0x1050   :  { %v2447_v23 = vpop.eup %2446  ;;  %v1884_v41 = vadd.f32 1.0, %v1883_v52  ;;  %v1873_v36 = vadd.f32 1.1283791, %v1872_v40 }
0x1051   :  { %v1846_v43 = vmul.f32 %v2447_v23, %v1844_v13  ;;  %vm1851_vm12 = vweird.f32 %v2447_v23 }
0x1052   :  { %2448 = vrcp.f32 %v1884_v41  ;;  %vm1852_vm14 = vmor %vm1850_vm13, %vm1851_vm12  ;;  %v1896_v20 = vand.u32 2147483648, %v1884_v41  ;;  %v1894_v46 = vand.u32 2147483647, %v1884_v41  ;;  %vm1890_vm3 = vweird.f32 %v1884_v41 }
0x1053   :  { %v1847_v10 = vsub.f32 1.0, %v1846_v43  ;;  %v1874_v33 = vmul.f32 %v1873_v36, %v3059_v54 }
0x1054   :  { %v1897_v18 = vor.u32 1.1754944e-38, %v1896_v20  ;;  %vm1895_vm5 = vcmp.eq.f32.partialorder %v1894_v46, 8.507059e+37 }
0x1055   :  { %v1848_v25 = vmul.f32 %v2447_v23, %v1847_v10 }
0x1057   :  { %v1849_v29 = vadd.f32 %v2447_v23, %v1848_v25 }
0x1058   :  { %v2449_v53 = vpop.eup %2448 }
0x1059   :  { %v1853_v37 = vsel %vm1852_vm14, %v2447_v23, %v1849_v29  ;;  %v1886_v44 = vmul.f32 %v2449_v53, %v1884_v41  ;;  %vm1891_vm2 = vweird.f32 %v2449_v53  ;;  %v2358_v29 = vld [vmem:[%s3115_s8] ss:$0 sm:$0xff] }
0x105a   :  { %v1858_v45 = vsel %vm1855_vm15, %v1857_v38, %v1853_v37  ;;  %vm1892_vm4 = vmor %vm1890_vm3, %vm1891_vm2 }
0x105b   :  { %v1887_v17 = vsub.f32 1.0, %v1886_v44  ;;  %v1859_v55 = vmul.f32 %v1858_v45, %v1834_v51 }
0x105d   :  { %v1888_v57 = vmul.f32 %v2449_v53, %v1887_v17  ;;  %v2222_v42 = vclamps-f32 %v1859_v55, 1.0 }
0x105f   :  { %v1889_v58 = vadd.f32 %v2449_v53, %v1888_v57  ;;  %v1902_v1 = vadd.f32 1.0, %v2222_v42 }
0x1061   :  { %v1893_v49 = vsel %vm1892_vm4, %v2449_v53, %v1889_v58  ;;  %v1904_v4 = vmul.f32 %v1902_v1, %v1818_v2 }
0x1062   :  { %v1898_v50 = vsel %vm1895_vm5, %v1897_v18, %v1893_v49 }
0x1063   :  { %v1899_v27 = vmul.f32 %v1898_v50, %v1874_v33 }
0x1065   :  { %v2223_v30 = vclamps-f32 %v1899_v27, 1.0 }
0x1067   :  { %v1903_v31 = vadd.f32 1.0, %v2223_v30 }
0x1069   :  { %v1905_v5 = vmul.f32 %v1903_v31, %v1819_v32 }
0x106b   :  { %v1906_v6 = vpack.c.bf16 %v1905_v5, %v1904_v4 }
0x106d   :  { %1963 = vmatmul.bf16.vlgmr.msra.gmra.mxu2 %v1906_v6 }
0x10f0   :  { %v1964_v7 = vpop.f32.mrf.mxu2 }
0x10f1   :  { %v1969_v54 = vadd.f32 %v1964_v7, %v3005_v56 }
0x10f3   :  { %v1972_v8 = vadd.f32 %v1971_v3, %v1969_v54 }
0x10f5   :  { %v1976_v11 = vsel %vm221_vm1, %v1972_v8, 0.0 }
0x10f6   :  { %1977 = vadd.xlane.f32.xlu1 %v1976_v11 }
0x10f8   :  { %v1966_v61 = vpop.f32.mrf.mxu2 }
0x10f9   :  { %v1970_v63 = vadd.f32 %v1966_v61, %v3010_v47 }
0x10fb   :  { %v1973_v60 = vadd.f32 %v1971_v3, %v1970_v63 }
0x10fd   :  { %v1979_v28 = vsel %vm221_vm1, %v1973_v60, 0.0 }
0x10fe   :  { %1980 = vadd.xlane.f32.xlu0 %v1979_v28 }
0x1169   :  { %v1978_v12 = vpop.xlane.xlu1 %1977 }
0x116a   :  { %v1982_v13 = vmul.f32 %v1978_v12, %v2584_v39 }
0x116c   :  { %v1984_v14 = vsub.f32 %v1972_v8, %v1982_v13 }
0x116e   :  { %v1986_v15 = vmul.f32 %v1984_v14, %v1984_v14 }
0x1170   :  { %v1988_v59 = vsel %vm221_vm1, %v1986_v15, 0.0 }
0x1171   :  { %1989 = vadd.xlane.f32.xlu2 %v1988_v59  ;;  %v1981_v56 = vpop.xlane.xlu0 %1980 }
0x1172   :  { %v1983_v19 = vmul.f32 %v1981_v56, %v2584_v39 }
0x1174   :  { %v1985_v0 = vsub.f32 %v1973_v60, %v1983_v19 }
0x1176   :  { %v1987_v21 = vmul.f32 %v1985_v0, %v1985_v0 }
0x1178   :  { %v1991_v22 = vsel %vm221_vm1, %v1987_v21, 0.0 }
0x1179   :  { %1992 = vadd.xlane.f32.xlu1 %v1991_v22 }
0x11e4   :  { %v1990_v47 = vpop.xlane.xlu2 %1989 }
0x11e5   :  { %v1994_v48 = vmul.f32 %v1990_v47, %v2584_v39 }
0x11e7   :  { %v1996_v52 = vadd.f32 1e-06, %v1994_v48 }
0x11e9   :  { %2450 = vrsqrt.f32 %v1996_v52  ;;  %vm2004_vm0 = vweird.f32 %v1996_v52 }
0x11ec   :  { %v1993_v23 = vpop.xlane.xlu1 %1992 }
0x11ed   :  { %v1995_v16 = vmul.f32 %v1993_v23, %v2584_v39  ;;  %v2359_v39 = vld [vmem:[%s3115_s8 + $0x1] ss:$0 sm:$0xff] }
0x11ef   :  { %v2451_v43 = vpop.eup %2450  ;;  %v1997_v9 = vadd.f32 1e-06, %v1995_v16 }
0x11f0   :  { %v1999_v41 = vmul.f32 %v2451_v43, %v1996_v52  ;;  %vm2005_vm6 = vweird.f32 %v2451_v43 }
0x11f1   :  { %2452 = vrsqrt.f32 %v1997_v9  ;;  %vm2006_vm9 = vmor %vm2004_vm0, %vm2005_vm6  ;;  %vm2014_vm11 = vweird.f32 %v1997_v9 }
0x11f2   :  { %v2000_v10 = vmul.f32 %v2451_v43, %v1999_v41 }
0x11f4   :  { %v2001_v24 = vmul.f32 0.5, %v2000_v10 }
0x11f6   :  { %v2002_v25 = vsub.f32 1.5, %v2001_v24 }
0x11f7   :  { %v2453_v62 = vpop.eup %2452 }
0x11f8   :  { %v2003_v26 = vmul.f32 %v2451_v43, %v2002_v25  ;;  %v2009_v34 = vmul.f32 %v2453_v62, %v1997_v9  ;;  %vm2015_vm10 = vweird.f32 %v2453_v62 }
0x11f9   :  { %vm2016_vm7 = vmor %vm2014_vm11, %vm2015_vm10 }
0x11fa   :  { %v2007_v35 = vsel %vm2006_vm9, %v2451_v43, %v2003_v26  ;;  %v2010_v53 = vmul.f32 %v2453_v62, %v2009_v34 }
0x11fb   :  { %v2018_v37 = vmul.f32 %v2007_v35, %v1984_v14 }
0x11fc   :  { %v2011_v38 = vmul.f32 0.5, %v2010_v53 }
0x11fd   :  { %v2021_v40 = vmul.f32 %v2358_v29, %v2018_v37 }
0x11fe   :  { %v2012_v44 = vsub.f32 1.5, %v2011_v38 }
0x11ff   :  { %v2024_v45 = vadd.f32 %v2359_v39, %v2021_v40 }
0x1200   :  { %v2013_v51 = vmul.f32 %v2453_v62, %v2012_v44 }
0x1201   :  { %2026 = vst.msk [vmem:[%s3116_s9] sm:$0xff] %vm221_vm1, %v2024_v45 }
0x1202   :  { %v2017_v17 = vsel %vm2016_vm7, %v2453_v62, %v2013_v51 }
0x1203   :  { %v2019_v36 = vmul.f32 %v2017_v17, %v1985_v0 }
0x1205   :  { %v2022_v20 = vmul.f32 %v2358_v29, %v2019_v36 }
0x1207   :  { %v2025_v55 = vadd.f32 %v2359_v39, %v2022_v20 }
0x1209   :  { %2027 = vst.msk [vmem:[%s3116_s9 + $0x8] sm:$0xff] %vm221_vm1, %v2025_v55 }

</bundles_post_ra>
